<compile_context>
chip_gen: v5e
topology: v5e:2x2
jax: 0.10.0
libtpu: 0.0.40
codegen_flags: <defaults>
</compile_context>

<pallas_src>
import jax
import jax.numpy as jnp
from jax.experimental import pallas as pl
from jax.experimental.pallas import tpu as pltpu


def _device_kind():
    try:
        return jax.devices()[0].device_kind.lower()
    except Exception:
        return ""


def _vmem_limit_bytes():
    kind = _device_kind()
    # v5e/v5p/v6e have 128 MiB VMEM per core -> use most of it; v7x only has 64 MiB physical.
    if ("v5" in kind) or ("v6" in kind):
        return 100 * 1024 * 1024
    return 48 * 1024 * 1024


def _exp_dtype():
    kind = _device_kind()
    # bf16 EUP exists on v6e / v7x only; keep f32 elsewhere (v5e has no bf16 EUP/VPU).
    if ("v6" in kind) or ("v7" in kind) or ("7x" in kind):
        return jnp.bfloat16
    return jnp.float32


def _round_up(v, m):
    return ((v + m - 1) // m) * m


def _pick_tile(n, candidates=(512, 256, 128)):
    """Largest lane/sublane friendly tile that divides n (falls back to full n)."""
    for t in candidates:
        if n >= t and n % t == 0:
            return t
    return n


def self_attn_forward(x, params):
    B, C, W, H = x.shape
    assert W % 2 == 0 and H % 2 == 0, "2x2 max-pool requires even spatial dims"
    Cq = C // 4
    N = W * H
    Wp, Hp = W // 2, H // 2
    M = Wp * Hp

    # Pad the query/key channel count to a sublane-aligned size with zero weight rows.
    # Zero rows contribute exactly 0 to the energy matmul, so results are unchanged, but the
    # k/v split in kernel A and the q-tile transpose in kernel B become 8-aligned.
    Cqp = _round_up(max(Cq, 1), 8)
    pad = Cqp - Cq
    Ckv = Cqp + C

    wq = jnp.pad(params["wq"], ((0, pad), (0, 0)))
    bq = jnp.pad(params["bq"], ((0, pad),))
    wk = jnp.pad(params["wk"], ((0, pad), (0, 0)))
    bk = jnp.pad(params["bk"], ((0, pad),))
    wv, bv = params["wv"], params["bv"]

    vmem_limit = _vmem_limit_bytes()
    exp_dtype = _exp_dtype()

    # ----------------- layout glue (everything except x_off is a free view) -----------------
    # 4 pool offsets of x, offset-major:
    #   x_off[b, dw*2+dh, c, wp*Hp+hp] = x[b, c, 2*wp+dw, 2*hp+dh]
    x_off = jnp.transpose(x.reshape(B, C, Wp, 2, Hp, 2), (0, 3, 5, 1, 2, 4))
    x_off = x_off.reshape(B, 4, C, M).astype(jnp.bfloat16)                        # (B,4,C,M)

    x_cn = x.reshape(B, C, N)                   # free view: semantic (channel, position) frame
    x_res = x.reshape(B, N, C)                  # free raw .view() reinterpretation (residual)

    wq_b = wq.astype(jnp.bfloat16)                                                # (Cqp, C)
    bq2 = bq.reshape(Cqp, 1).astype(jnp.float32)
    wkv = jnp.concatenate([wk, wv], axis=0).astype(jnp.bfloat16)                  # (Ckv, C)
    bkv = jnp.concatenate([bk, bv], axis=0).reshape(Ckv, 1).astype(jnp.float32)   # (Ckv, 1)

    # -------- kernel A: fused key/value 1x1-conv + 2x2 max-pool, tiled over M ---------------
    TM = _pick_tile(M)
    MT = M // TM

    def proj_kv_kernel(xo_ref, wkv_ref, bkv_ref, k_ref, v_ref, acc_ref):
        o = pl.program_id(2)
        # conv1x1 on one pool offset of this M tile
        r = jnp.dot(wkv_ref[...], xo_ref[...],
                    preferred_element_type=jnp.float32)                 # (Ckv, TM) f32

        @pl.when(o == 0)
        def _():
            acc_ref[...] = r

        @pl.when(o > 0)
        def _():
            acc_ref[...] = jnp.maximum(acc_ref[...], r)

        @pl.when(o == 3)
        def _():
            # maxpool(conv1x1(x)) == max over the 4 offsets; bias commutes with the max.
            kv = acc_ref[...] + bkv_ref[...]                            # (Ckv, TM) f32
            k_ref[...] = kv[:Cqp].astype(jnp.bfloat16)                  # 8-aligned split
            v_ref[...] = kv[Cqp:].astype(jnp.bfloat16)

    k_out, v_out = pl.pallas_call(
        proj_kv_kernel,
        grid=(B, MT, 4),                        # offsets innermost -> running max in scratch
        in_specs=[
            pl.BlockSpec((None, None, C, TM), lambda b, m, o: (b, o, 0, m)),
            pl.BlockSpec((Ckv, C), lambda b, m, o: (0, 0)),
            pl.BlockSpec((Ckv, 1), lambda b, m, o: (0, 0)),
        ],
        out_specs=[
            pl.BlockSpec((None, Cqp, TM), lambda b, m, o: (b, 0, m)),
            pl.BlockSpec((None, C, TM), lambda b, m, o: (b, 0, m)),
        ],
        out_shape=[
            jax.ShapeDtypeStruct((B, Cqp, M), jnp.bfloat16),
            jax.ShapeDtypeStruct((B, C, M), jnp.bfloat16),
        ],
        scratch_shapes=[pltpu.VMEM((Ckv, TM), jnp.float32)],
        compiler_params=pltpu.CompilerParams(
            dimension_semantics=("parallel", "parallel", "arbitrary"),
            vmem_limit_bytes=vmem_limit),
    )(x_off, wkv, bkv)

    # PyTorch: pooled value (B, C, Wp, Hp).view(B, M, -1) is a raw row-major reinterpretation
    # to (B, M, C), NOT a transpose.  v_out's memory order matches, so this reshape is free.
    pv = v_out.reshape(B, M, C)

    # -------- kernel B: fused query conv + energy + softmax + value bmm + residual ----------
    tn_candidates = (256, 128) if M >= 2048 else (512, 256, 128)
    TN = _pick_tile(N, tn_candidates)
    NT = N // TN

    def attn_kernel(xcn_ref, wq_ref, bq_ref, k_ref, pv_ref, xres_ref, o_ref):
        # query 1x1 conv on the (C, TN) tile of x in its natural frame (no wrapper transpose)
        q_t = jnp.dot(wq_ref[...], xcn_ref[...].astype(jnp.bfloat16),
                      preferred_element_type=jnp.float32) + bq_ref[...]     # (Cqp, TN) f32
        q = jnp.transpose(q_t)                                              # small XLU transpose
        energy = jnp.dot(q.astype(jnp.bfloat16), k_ref[...],
                         preferred_element_type=jnp.float32)                # (TN, M) f32
        m = jnp.max(energy, axis=-1, keepdims=True)
        e = jnp.exp((energy - m).astype(exp_dtype))                         # bf16 exp on v6e/v7x
        denom = jnp.sum(e.astype(jnp.float32), axis=-1, keepdims=True)      # row sum in f32
        out = jnp.dot(e.astype(jnp.bfloat16), pv_ref[...],
                      preferred_element_type=jnp.float32)                   # (TN, C) f32
        # normalize AFTER the PV matmul: (TN, C) multiply instead of (TN, M); mathematically equal
        o_ref[...] = out * pl.reciprocal(denom, approx=True) + xres_ref[...]

    out_flat = pl.pallas_call(
        attn_kernel,
        grid=(B, NT),
        in_specs=[
            pl.BlockSpec((None, C, TN), lambda b, n: (b, 0, n)),
            pl.BlockSpec((Cqp, C), lambda b, n: (0, 0)),
            pl.BlockSpec((Cqp, 1), lambda b, n: (0, 0)),
            pl.BlockSpec((None, Cqp, M), lambda b, n: (b, 0, 0)),
            pl.BlockSpec((None, M, C), lambda b, n: (b, 0, 0)),
            pl.BlockSpec((None, TN, C), lambda b, n: (b, n, 0)),
        ],
        out_specs=pl.BlockSpec((None, TN, C), lambda b, n: (b, n, 0)),
        out_shape=jax.ShapeDtypeStruct((B, N, C), jnp.float32),
        compiler_params=pltpu.CompilerParams(
            dimension_semantics=("parallel", "parallel"),
            vmem_limit_bytes=vmem_limit),
    )(x_cn, wq_b, bq2, k_out, pv, x_res)

    # PyTorch `out.view(B, C, W, H)`: raw row-major reinterpretation back to NCHW (free).
    return out_flat.reshape(B, C, W, H)


def _reference(x, params):
    """Pure-JAX f32 replica of the PyTorch forward (including the raw .view semantics)."""
    B, C, W, H = x.shape
    Cq = C // 4
    N = W * H
    Wp, Hp = W // 2, H // 2
    M = Wp * Hp

    def conv1x1(w, b):
        return jnp.einsum('oc,bchw->bohw', w, x) + b[None, :, None, None]

    def pool2(y):
        Bc, Co = y.shape[:2]
        return jnp.max(y.reshape(Bc, Co, Wp, 2, Hp, 2), axis=(3, 5))

    q = conv1x1(params["wq"], params["bq"]).reshape(B, Cq, N).transpose(0, 2, 1)   # (B,N,Cq)
    k = pool2(conv1x1(params["wk"], params["bk"])).reshape(B, Cq, M)               # (B,Cq,M)
    v = pool2(conv1x1(params["wv"], params["bv"])).reshape(B, M, C)                # raw view
    energy = jnp.einsum('bnc,bcm->bnm', q, k)
    attn = jax.nn.softmax(energy, axis=-1)
    out = jnp.einsum('bnm,bmc->bnc', attn, v)
    return out.reshape(B, C, W, H) + x


def init_params(key, C):
    """Deterministic synthetic parameters with the shapes implied by __init__ (1x1 convs)."""
    Cq = C // 4
    ks = jax.random.split(key, 6)
    scale = 0.1
    return {
        "wq": scale * jax.random.normal(ks[0], (Cq, C), jnp.float32),
        "bq": scale * jax.random.normal(ks[1], (Cq,), jnp.float32),
        "wk": scale * jax.random.normal(ks[2], (Cq, C), jnp.float32),
        "bk": scale * jax.random.normal(ks[3], (Cq,), jnp.float32),
        "wv": scale * jax.random.normal(ks[4], (C, C), jnp.float32),
        "bv": scale * jax.random.normal(ks[5], (C,), jnp.float32),
    }


if __name__ == "__main__":
    key = jax.random.PRNGKey(0)
    kx, kp = jax.random.split(key)

    B, C, W, H = 2, 8, 16, 16          # in_dim=8 -> query/key channels = 2
    x = jax.random.normal(kx, (B, C, W, H), jnp.float32)
    params = init_params(kp, C)

    out = jax.jit(self_attn_forward)(x, params)
    out = jax.block_until_ready(out)
    assert out.shape == (B, C, W, H) and out.dtype == jnp.float32

    ref = _reference(x, params)
    max_err = jnp.max(jnp.abs(out - ref))
    # bf16 matmul operands (+ bf16 exp on v6e/v7x) + approx reciprocal -> loose tolerance
    assert jnp.allclose(out, ref, rtol=3e-2, atol=3e-2), f"max abs err {max_err}"
    print("KERNEL_OK")
</pallas_src>

<mosaic_0001>
module attributes {stable_mosaic.version = 11 : i64} {
  func.func @proj_kv_kernel(%arg0: i32, %arg1: i32, %arg2: i32, %arg3: memref<1x1x8x64xbf16, #tpu.memory_space<vmem>>, %arg4: memref<16x8xbf16, #tpu.memory_space<vmem>>, %arg5: memref<16x1xf32, #tpu.memory_space<vmem>>, %arg6: memref<1x8x64xbf16, #tpu.memory_space<vmem>>, %arg7: memref<1x8x64xbf16, #tpu.memory_space<vmem>>, %arg8: memref<16x64xf32, #tpu.memory_space<vmem>>) attributes {dimension_semantics = [#tpu.dimension_semantics<parallel>, #tpu.dimension_semantics<parallel>, #tpu.dimension_semantics<arbitrary>], iteration_bounds = array<i64: 2, 1, 4>, scalar_prefetch = 0 : i64, scratch_operands = 1 : i64, tpu.core_type = #tpu.core_type<tc>, window_params = [{transform_indices = @transform_0, window_bounds = array<i64: 1, 1, 8, 64>}, {pipeline_mode = #tpu.pipeline_mode<synchronous>, transform_indices = @transform_1, window_bounds = array<i64: 16, 8>}, {pipeline_mode = #tpu.pipeline_mode<synchronous>, transform_indices = @transform_2, window_bounds = array<i64: 16, 1>}, {transform_indices = @transform_3, window_bounds = array<i64: 1, 8, 64>}, {transform_indices = @transform_4, window_bounds = array<i64: 1, 8, 64>}]} {
    %c0 = arith.constant 0 : index
    %c0_0 = arith.constant 0 : index
    %0 = vector.load %arg4[%c0, %c0_0] : memref<16x8xbf16, #tpu.memory_space<vmem>>, vector<16x8xbf16>
    %c0_1 = arith.constant 0 : index
    %c0_2 = arith.constant 0 : index
    %c0_3 = arith.constant 0 : index
    %c0_4 = arith.constant 0 : index
    %1 = vector.load %arg3[%c0_1, %c0_2, %c0_3, %c0_4] : memref<1x1x8x64xbf16, #tpu.memory_space<vmem>>, vector<1x1x8x64xbf16>
    %2 = vector.shape_cast %1 : vector<1x1x8x64xbf16> to vector<8x64xbf16>
    %cst = arith.constant dense<0.000000e+00> : vector<16x64xf32>
    %3 = tpu.matmul %0, %2, %cst {dimension_numbers = #tpu.dot_dimension_numbers<[1], [0], [0], [1], [0, 0, 1, 1], [], []>} : vector<16x8xbf16>, vector<8x64xbf16>, vector<16x64xf32> -> vector<16x64xf32>
    %c0_i32 = arith.constant 0 : i32
    %4 = arith.cmpi eq, %arg2, %c0_i32 : i32
    %5 = arith.extui %4 : i1 to i32
    %c0_i32_5 = arith.constant 0 : i32
    %6 = arith.cmpi ne, %5, %c0_i32_5 : i32
    scf.if %6 {
      %c0_9 = arith.constant 0 : index
      %c0_10 = arith.constant 0 : index
      %13 = vector.load %arg8[%c0_9, %c0_10] : memref<16x64xf32, #tpu.memory_space<vmem>>, vector<16x64xf32>
      tpu.vector_store %arg8[%c0_9, %c0_10], %3 {strides = array<i32>} : memref<16x64xf32, #tpu.memory_space<vmem>>, vector<16x64xf32>,
    } else {
    }
    %c0_i32_6 = arith.constant 0 : i32
    %7 = arith.cmpi sgt, %arg2, %c0_i32_6 : i32
    %8 = arith.extui %7 : i1 to i32
    %c0_i32_7 = arith.constant 0 : i32
    %9 = arith.cmpi ne, %8, %c0_i32_7 : i32
    scf.if %9 {
      %c0_9 = arith.constant 0 : index
      %c0_10 = arith.constant 0 : index
      %13 = vector.load %arg8[%c0_9, %c0_10] : memref<16x64xf32, #tpu.memory_space<vmem>>, vector<16x64xf32>
      %14 = arith.maximumf %13, %3 : vector<16x64xf32>
      %c0_11 = arith.constant 0 : index
      %c0_12 = arith.constant 0 : index
      %15 = vector.load %arg8[%c0_11, %c0_12] : memref<16x64xf32, #tpu.memory_space<vmem>>, vector<16x64xf32>
      tpu.vector_store %arg8[%c0_11, %c0_12], %14 {strides = array<i32>} : memref<16x64xf32, #tpu.memory_space<vmem>>, vector<16x64xf32>,
    } else {
    }
    %c3_i32 = arith.constant 3 : i32
    %10 = arith.cmpi eq, %arg2, %c3_i32 : i32
    %11 = arith.extui %10 : i1 to i32
    %c0_i32_8 = arith.constant 0 : i32
    %12 = arith.cmpi ne, %11, %c0_i32_8 : i32
    scf.if %12 {
      %c0_9 = arith.constant 0 : index
      %c0_10 = arith.constant 0 : index
      %13 = vector.load %arg8[%c0_9, %c0_10] : memref<16x64xf32, #tpu.memory_space<vmem>>, vector<16x64xf32>
      %c0_11 = arith.constant 0 : index
      %c0_12 = arith.constant 0 : index
      %14 = vector.load %arg5[%c0_11, %c0_12] : memref<16x1xf32, #tpu.memory_space<vmem>>, vector<16x1xf32>
      %15 = vector.broadcast %14 : vector<16x1xf32> to vector<16x64xf32>
      %16 = arith.addf %13, %15 : vector<16x64xf32>
      %17 = vector.extract_strided_slice %16 {offsets = [0, 0], sizes = [8, 64], strides = [1, 1]} : vector<16x64xf32> to vector<8x64xf32>
      %18 = arith.truncf %17 : vector<8x64xf32> to vector<8x64xbf16>
      %c0_13 = arith.constant 0 : index
      %c0_14 = arith.constant 0 : index
      %c0_15 = arith.constant 0 : index
      %19 = vector.load %arg6[%c0_13, %c0_14, %c0_15] : memref<1x8x64xbf16, #tpu.memory_space<vmem>>, vector<1x8x64xbf16>
      %20 = vector.shape_cast %19 : vector<1x8x64xbf16> to vector<8x64xbf16>
      %21 = vector.shape_cast %18 : vector<8x64xbf16> to vector<1x8x64xbf16>
      tpu.vector_store %arg6[%c0_13, %c0_14, %c0_15], %21 {strides = array<i32>} : memref<1x8x64xbf16, #tpu.memory_space<vmem>>, vector<1x8x64xbf16>,
      %22 = vector.extract_strided_slice %16 {offsets = [8, 0], sizes = [8, 64], strides = [1, 1]} : vector<16x64xf32> to vector<8x64xf32>
      %23 = arith.truncf %22 : vector<8x64xf32> to vector<8x64xbf16>
      %c0_16 = arith.constant 0 : index
      %c0_17 = arith.constant 0 : index
      %c0_18 = arith.constant 0 : index
      %24 = vector.load %arg7[%c0_16, %c0_17, %c0_18] : memref<1x8x64xbf16, #tpu.memory_space<vmem>>, vector<1x8x64xbf16>
      %25 = vector.shape_cast %24 : vector<1x8x64xbf16> to vector<8x64xbf16>
      %26 = vector.shape_cast %23 : vector<8x64xbf16> to vector<1x8x64xbf16>
      tpu.vector_store %arg7[%c0_16, %c0_17, %c0_18], %26 {strides = array<i32>} : memref<1x8x64xbf16, #tpu.memory_space<vmem>>, vector<1x8x64xbf16>,
    } else {
    }
    return
  }
  func.func @transform_0(%arg0: i32, %arg1: i32, %arg2: i32) -> (i32, i32, i32, i32) {
    %c0_i32 = arith.constant 0 : i32
    %c0_i32_0 = arith.constant 0 : i32
    return %arg0, %arg2, %c0_i32, %arg1 : i32, i32, i32, i32
  }
  func.func @transform_1(%arg0: i32, %arg1: i32, %arg2: i32) -> (i32, i32) {
    %c0_i32 = arith.constant 0 : i32
    %c0_i32_0 = arith.constant 0 : i32
    %c0_i32_1 = arith.constant 0 : i32
    return %c0_i32, %c0_i32_0 : i32, i32
  }
  func.func @transform_2(%arg0: i32, %arg1: i32, %arg2: i32) -> (i32, i32) {
    %c0_i32 = arith.constant 0 : i32
    %c0_i32_0 = arith.constant 0 : i32
    %c0_i32_1 = arith.constant 0 : i32
    return %c0_i32, %c0_i32_0 : i32, i32
  }
  func.func @transform_3(%arg0: i32, %arg1: i32, %arg2: i32) -> (i32, i32, i32) {
    %c0_i32 = arith.constant 0 : i32
    %c0_i32_0 = arith.constant 0 : i32
    return %arg0, %c0_i32, %arg1 : i32, i32, i32
  }
  func.func @transform_4(%arg0: i32, %arg1: i32, %arg2: i32) -> (i32, i32, i32) {
    %c0_i32 = arith.constant 0 : i32
    %c0_i32_0 = arith.constant 0 : i32
    return %arg0, %c0_i32, %arg1 : i32, i32, i32
  }
}

module attributes {stable_mosaic.version = 11 : i64} {
  func.func @attn_kernel(%arg0: i32, %arg1: i32, %arg2: memref<1x8x256xf32, #tpu.memory_space<vmem>>, %arg3: memref<8x8xbf16, #tpu.memory_space<vmem>>, %arg4: memref<8x1xf32, #tpu.memory_space<vmem>>, %arg5: memref<1x8x64xbf16, #tpu.memory_space<vmem>>, %arg6: memref<1x64x8xbf16, #tpu.memory_space<vmem>>, %arg7: memref<1x256x8xf32, #tpu.memory_space<vmem>>, %arg8: memref<1x256x8xf32, #tpu.memory_space<vmem>>) attributes {dimension_semantics = [#tpu.dimension_semantics<parallel>, #tpu.dimension_semantics<parallel>], iteration_bounds = array<i64: 2, 1>, scalar_prefetch = 0 : i64, scratch_operands = 0 : i64, tpu.core_type = #tpu.core_type<tc>, window_params = [{transform_indices = @transform_0, window_bounds = array<i64: 1, 8, 256>}, {pipeline_mode = #tpu.pipeline_mode<synchronous>, transform_indices = @transform_1, window_bounds = array<i64: 8, 8>}, {pipeline_mode = #tpu.pipeline_mode<synchronous>, transform_indices = @transform_2, window_bounds = array<i64: 8, 1>}, {transform_indices = @transform_3, window_bounds = array<i64: 1, 8, 64>}, {transform_indices = @transform_4, window_bounds = array<i64: 1, 64, 8>}, {transform_indices = @transform_5, window_bounds = array<i64: 1, 256, 8>}, {transform_indices = @transform_6, window_bounds = array<i64: 1, 256, 8>}]} {
    %c0 = arith.constant 0 : index
    %c0_0 = arith.constant 0 : index
    %0 = vector.load %arg3[%c0, %c0_0] : memref<8x8xbf16, #tpu.memory_space<vmem>>, vector<8x8xbf16>
    %c0_1 = arith.constant 0 : index
    %c0_2 = arith.constant 0 : index
    %c0_3 = arith.constant 0 : index
    %1 = vector.load %arg2[%c0_1, %c0_2, %c0_3] : memref<1x8x256xf32, #tpu.memory_space<vmem>>, vector<1x8x256xf32>
    %2 = vector.shape_cast %1 : vector<1x8x256xf32> to vector<8x256xf32>
    %3 = arith.truncf %2 : vector<8x256xf32> to vector<8x256xbf16>
    %cst = arith.constant dense<0.000000e+00> : vector<8x256xf32>
    %4 = tpu.matmul %0, %3, %cst {dimension_numbers = #tpu.dot_dimension_numbers<[1], [0], [0], [1], [0, 0, 1, 1], [], []>} : vector<8x8xbf16>, vector<8x256xbf16>, vector<8x256xf32> -> vector<8x256xf32>
    %c0_4 = arith.constant 0 : index
    %c0_5 = arith.constant 0 : index
    %5 = vector.load %arg4[%c0_4, %c0_5] : memref<8x1xf32, #tpu.memory_space<vmem>>, vector<8x1xf32>
    %6 = vector.broadcast %5 : vector<8x1xf32> to vector<8x256xf32>
    %7 = arith.addf %4, %6 : vector<8x256xf32>
    %8 = tpu.transpose %7, [1, 0] : vector<8x256xf32> -> vector<256x8xf32>
    %9 = arith.truncf %8 : vector<256x8xf32> to vector<256x8xbf16>
    %c0_6 = arith.constant 0 : index
    %c0_7 = arith.constant 0 : index
    %c0_8 = arith.constant 0 : index
    %10 = vector.load %arg5[%c0_6, %c0_7, %c0_8] : memref<1x8x64xbf16, #tpu.memory_space<vmem>>, vector<1x8x64xbf16>
    %11 = vector.shape_cast %10 : vector<1x8x64xbf16> to vector<8x64xbf16>
    %cst_9 = arith.constant dense<0.000000e+00> : vector<256x64xf32>
    %12 = tpu.matmul %9, %11, %cst_9 {dimension_numbers = #tpu.dot_dimension_numbers<[1], [0], [0], [1], [0, 0, 1, 1], [], []>} : vector<256x8xbf16>, vector<8x64xbf16>, vector<256x64xf32> -> vector<256x64xf32>
    %cst_10 = arith.constant dense<0xFF800000> : vector<256xf32>
    %13 = vector.multi_reduction <maximumf>, %12, %cst_10 [1] : vector<256x64xf32> to vector<256xf32>
    %14 = vector.shape_cast %13 : vector<256xf32> to vector<256x1xf32>
    %15 = vector.broadcast %14 : vector<256x1xf32> to vector<256x64xf32>
    %16 = arith.subf %12, %15 : vector<256x64xf32>
    %17 = math.exp %16 : vector<256x64xf32>
    %cst_11 = arith.constant dense<0.000000e+00> : vector<256xf32>
    %18 = vector.multi_reduction <add>, %17, %cst_11 [1] : vector<256x64xf32> to vector<256xf32>
    %19 = vector.shape_cast %18 : vector<256xf32> to vector<256x1xf32>
    %20 = arith.truncf %17 : vector<256x64xf32> to vector<256x64xbf16>
    %c0_12 = arith.constant 0 : index
    %c0_13 = arith.constant 0 : index
    %c0_14 = arith.constant 0 : index
    %21 = vector.load %arg6[%c0_12, %c0_13, %c0_14] : memref<1x64x8xbf16, #tpu.memory_space<vmem>>, vector<1x64x8xbf16>
    %22 = vector.shape_cast %21 : vector<1x64x8xbf16> to vector<64x8xbf16>
    %cst_15 = arith.constant dense<0.000000e+00> : vector<256x8xf32>
    %23 = tpu.matmul %20, %22, %cst_15 {dimension_numbers = #tpu.dot_dimension_numbers<[1], [0], [0], [1], [0, 0, 1, 1], [], []>} : vector<256x64xbf16>, vector<64x8xbf16>, vector<256x8xf32> -> vector<256x8xf32>
    %24 = tpu.reciprocal %19 {approx = true} : vector<256x1xf32> -> vector<256x1xf32>
    %25 = vector.broadcast %24 : vector<256x1xf32> to vector<256x8xf32>
    %26 = arith.mulf %23, %25 : vector<256x8xf32>
    %c0_16 = arith.constant 0 : index
    %c0_17 = arith.constant 0 : index
    %c0_18 = arith.constant 0 : index
    %27 = vector.load %arg7[%c0_16, %c0_17, %c0_18] : memref<1x256x8xf32, #tpu.memory_space<vmem>>, vector<1x256x8xf32>
    %28 = vector.shape_cast %27 : vector<1x256x8xf32> to vector<256x8xf32>
    %29 = arith.addf %26, %28 : vector<256x8xf32>
    %c0_19 = arith.constant 0 : index
    %c0_20 = arith.constant 0 : index
    %c0_21 = arith.constant 0 : index
    %30 = vector.load %arg8[%c0_19, %c0_20, %c0_21] : memref<1x256x8xf32, #tpu.memory_space<vmem>>, vector<1x256x8xf32>
    %31 = vector.shape_cast %30 : vector<1x256x8xf32> to vector<256x8xf32>
    %32 = vector.shape_cast %29 : vector<256x8xf32> to vector<1x256x8xf32>
    tpu.vector_store %arg8[%c0_19, %c0_20, %c0_21], %32 {strides = array<i32>} : memref<1x256x8xf32, #tpu.memory_space<vmem>>, vector<1x256x8xf32>,
    return
  }
  func.func @transform_0(%arg0: i32, %arg1: i32) -> (i32, i32, i32) {
    %c0_i32 = arith.constant 0 : i32
    %c0_i32_0 = arith.constant 0 : i32
    return %arg0, %c0_i32, %arg1 : i32, i32, i32
  }
  func.func @transform_1(%arg0: i32, %arg1: i32) -> (i32, i32) {
    %c0_i32 = arith.constant 0 : i32
    %c0_i32_0 = arith.constant 0 : i32
    %c0_i32_1 = arith.constant 0 : i32
    return %c0_i32, %c0_i32_0 : i32, i32
  }
  func.func @transform_2(%arg0: i32, %arg1: i32) -> (i32, i32) {
    %c0_i32 = arith.constant 0 : i32
    %c0_i32_0 = arith.constant 0 : i32
    %c0_i32_1 = arith.constant 0 : i32
    return %c0_i32, %c0_i32_0 : i32, i32
  }
  func.func @transform_3(%arg0: i32, %arg1: i32) -> (i32, i32, i32) {
    %c0_i32 = arith.constant 0 : i32
    %c0_i32_0 = arith.constant 0 : i32
    %c0_i32_1 = arith.constant 0 : i32
    return %arg0, %c0_i32, %c0_i32_0 : i32, i32, i32
  }
  func.func @transform_4(%arg0: i32, %arg1: i32) -> (i32, i32, i32) {
    %c0_i32 = arith.constant 0 : i32
    %c0_i32_0 = arith.constant 0 : i32
    %c0_i32_1 = arith.constant 0 : i32
    return %arg0, %c0_i32, %c0_i32_0 : i32, i32, i32
  }
  func.func @transform_5(%arg0: i32, %arg1: i32) -> (i32, i32, i32) {
    %c0_i32 = arith.constant 0 : i32
    %c0_i32_0 = arith.constant 0 : i32
    return %arg0, %arg1, %c0_i32 : i32, i32, i32
  }
  func.func @transform_6(%arg0: i32, %arg1: i32) -> (i32, i32, i32) {
    %c0_i32 = arith.constant 0 : i32
    %c0_i32_0 = arith.constant 0 : i32
    return %arg0, %arg1, %c0_i32 : i32, i32, i32
  }
}

</mosaic_0001>

<bundles_post_ra>
// kernel: self_attn_forward.2
= control target key start
LH: loop header
LB: loop body
LE: loop exit
PB: predicated region body
PF: predicated region fallthrough
CT: control target
= control target key end

     0   :  { %s593_s15 = smov 0   ;;  %s595_s16 = smov 0   ;;  %s678_s0 = inlined_call_operand.vmem [shape: bf16[2,4,8,64], index: 0, kind: input, shape index: {}]   ;;  %s679_s1 = inlined_call_operand.vmem [shape: bf16[16,8], index: 1, kind: input, shape index: {}]   ;;  %s680_s2 = inlined_call_operand.vmem [shape: f32[16,1], index: 2, kind: input, shape index: {}]   ;;  %s681_s3 = inlined_call_operand.vmem [shape: bf16[2,8,64], index: 3, kind: output, shape index: {0}]   ;;  %s682_s4 = inlined_call_operand.vmem [shape: bf16[2,8,64], index: 4, kind: output, shape index: {1}]  }
   0x1   :  { %s597_s17 = smov 0   ;;  %s599_s18 = smov 0  }
   0x2   :  { %s601_s19 = smov 0  }
   0x3 LB: > { %s27_s20 = sadd.s32 1, %s557_s17  ;;  %s34_s21 = sadd.s32 1, %s561_s18  ;;  %s565_s19 = sphi %s601_s19, %s15_s19   ;;  %s561_s18 = sphi %s599_s18, %s686_s18   ;;  %s557_s17 = sphi %s597_s17, %s685_s17   ;;  %s553_s16 = sphi %s595_s16, %s684_s16   ;;  %s549_s15 = sphi %s593_s15, %s683_s15  }
   0x4   : > { %p28_p0 = scmp.ge.s32.totalorder %s27_s20, 4  ;;  %p469_p1 = scmp.ge.s32.totalorder %s565_s19, 1 }
   0x5   : > { %p198_p2 = scmp.lt.s32.totalorder %s565_s19, 9 }
   0x6   : > { %s688_s20 = smov (%p28_p0, %s27_s20), 0  ;;  %s690_s21 = smov (!%p28_p0, %s34_s21), %s561_s18 }
   0x7   : > { %p199_p3 = pnand %p469_p1, %p198_p2  ;;  %p36_p4 = scmp.ge.s32.totalorder %s690_s21, 2 }
   0x8   : > { %p239_p5 = scmp.lt.s32.totalorder (!%p199_p3), %s553_s16, 1  ;;  %p241_p6 = scmp.lt.s32.totalorder (!%p199_p3), %s549_s15, 3 }
   0x9   : > { %s692_s21 = smov (%p36_p4, %s690_s21), 0  ;;  %202 = sbr.rel (%p199_p3) target bundleno = 311 (0x137), region = 32 }
   0xa   : > { %p479_p7 = scmp.ne.s32.totalorder (!%p199_p3), %s549_s15, 0 }
   0xe   : > { %s694_s16 = smov (!%p239_p5, %s553_s16), 1  ;;  %vm277_vm0 = vcmask 1043456   ;;  %v484_v2 = vld [vmem:[%s679_s1] sm:$0xff]  ;;  %vm273_vm1 = vcmask 64512  }
   0xf   : > { %s242_s22 = scalar_select %p241_p6, %s549_s15, 3 }
  0x10   : > { %s627_s23 = sshll.u32 %s694_s16, 2 }
  0x11   : > { %s247_s24 = sadd.s32 %s627_s23, %s242_s22  ;;  %s256_s27 = scalar_lea.vmem %s681_s3, %s627_s23 }
  0x12   : > { %s471_s28 = sshll.u32 %s247_s24, 2  ;;  %s263_s5 = scalar_lea.vmem %s682_s4, %s627_s23 }
  0x13   : > { %s249_s8 = scalar_lea.vmem %s678_s0, %s471_s28 }
  0x14   : > { %v267_v0 = vld [vmem:[%s249_s8] sm:$0xf] }
  0x15   : > { %v279_v1 = vsel %vm277_vm0, %v267_v0, 0 }
  0x16   : > { %288 = vmatpush.bf16.msra.mxu0 %v279_v1 }
  0x19   : > { %478 = vmatmul.msk.bf16.vlgmr.msra.gmra.mxu0 %vm273_vm1, %v484_v2 }
  0x96   : > { %v290_v3 = vpop.f32.mrf.mxu0 }
  0x9a   : > { %298 = sbr.rel (%p479_p7) target bundleno = 162 (0xa2), region = 36 }
  0x9e   : > { %v292_v4 = vpop.f32.mrf.mxu0 }
  0x9f   : > { %vm299_vm2 = vcmask 523264  }
  0xa0   : > { %300 = vst.msk [vmem:[#allocation2] sm:$0xff] %vm299_vm2, %v290_v3 }
  0xa1   : > { %301 = vst.msk [vmem:[#allocation2 + $0x8] sm:$0xff] %vm299_vm2, %v292_v4 }
  0xa2 PF: > { %p480_p8 = scmp.le.s32.totalorder %s549_s15, 0 }
  0xa4   : > { %305 = sbr.rel (%p480_p8) target bundleno = 174 (0xae), region = 40 }
  0xa9   : > { %v306_v5 = vld [vmem:[#allocation2] sm:$0xff]  ;;  %vm310_vm3 = vcmask 523264   ;;  %v307_v6 = vld [vmem:[#allocation2 + $0x8] sm:$0xff] }
  0xaa   : > { %v308_v7 = vmax.f32 %v306_v5, %v290_v3  ;;  %v309_v8 = vmax.f32 %v307_v6, %v292_v4 }
  0xac   : > { %311 = vst.msk [vmem:[#allocation2] sm:$0xff] %vm310_vm3, %v308_v7 }
  0xad   : > { %312 = vst.msk [vmem:[#allocation2 + $0x8] sm:$0xff] %vm310_vm3, %v309_v8 }
  0xae PF: > { %p481_p9 = scmp.ne.s32.totalorder %s549_s15, 3 }
  0xb0   : > { %316 = sbr.rel (%p481_p9) target bundleno = 311 (0x137), region = 44 }
  0xb5   : > { %v319_v9 = vld [vmem:[%s680_s2] sm:$0xff]  ;;  %v567_v10 = vmov 0   ;;  %v320_v11 = vld [vmem:[%s680_s2 + $0x8] sm:$0xff]  ;;  %vm334_vm4 = vcmask 519168   ;;  %v318_v16 = vld [vmem:[#allocation2 + $0x8] sm:$0xff] }
  0xb6   : > { %526 = vset.pattern.permute.xlu0 %v567_v10  ;;  %v317_v12 = vld [vmem:[#allocation2] sm:$0xff] }
  0xb7   : > { %323 = vperm.xlu0 %526, %v319_v9  }
  0xbf   : > { %328 = vperm.xlu0 %526, %v320_v11  }
 0x129   : > { %v324_v13 = vpop.permute.xlu0 %323 }
 0x12a   : > { %v331_v14 = vadd.f32 %v324_v13, %v317_v12 }
 0x12c   : > { %v333_v15 = vpack.c.bf16 %v331_v14, %v331_v14 }
 0x12e   : > { %335 = vst.msk [vmem:[%s256_s27] sm:$0xf] %vm334_vm4, %v333_v15 }
 0x131   : > { %v329_v17 = vpop.permute.xlu0 %328 }
 0x132   : > { %v332_v18 = vadd.f32 %v329_v17, %v318_v16 }
 0x134   : > { %v336_v19 = vpack.c.bf16 %v332_v18, %v332_v18 }
 0x136   : > { %337 = vst.msk [vmem:[%s263_s5] sm:$0xf] %vm334_vm4, %v336_v19 }
 0x137 PF: > { %s15_s19 = sadd.s32 1, %s565_s19   ;;  %s683_s15 = smov %s557_s17 }
 0x138   : > { %p12_p10 = scmp.ge.s32.totalorder %s15_s19, 10   ;;  %s684_s16 = smov %s561_s18 }
 0x139   : > { %s685_s17 = smov %s688_s20  ;;  %s686_s18 = smov %s692_s21 }
 0x13a   :  { %14 = sbr.rel (!%p12_p10) target bundleno = 3 (0x3), region = 86 }

// kernel: self_attn_forward.3
= control target key start
LH: loop header
LB: loop body
LE: loop exit
PB: predicated region body
PF: predicated region fallthrough
CT: control target
= control target key end

     0   :  { %s1691_s21 = smov 0   ;;  %s1693_s22 = smov 0   ;;  %s2162_s0 = inlined_call_operand.vmem [shape: f32[2,8,256], index: 0, kind: input, shape index: {}]   ;;  %s2163_s1 = inlined_call_operand.vmem [shape: bf16[8,8], index: 1, kind: input, shape index: {}]   ;;  %s2164_s2 = inlined_call_operand.vmem [shape: f32[8,1], index: 2, kind: input, shape index: {}]   ;;  %s2165_s3 = inlined_call_operand.vmem [shape: bf16[2,8,64], index: 3, kind: input, shape index: {}]   ;;  %s2166_s4 = inlined_call_operand.vmem [shape: bf16[2,64,8], index: 4, kind: input, shape index: {}]   ;;  %s2167_s5 = inlined_call_operand.vmem [shape: f32[2,256,8], index: 5, kind: input, shape index: {}]   ;;  %s2168_s6 = inlined_call_operand.vmem [shape: f32[2,256,8], index: 6, kind: output, shape index: {}]  }
   0x1   :  { %s1695_s23 = smov 0  }
   0x2 LB: > { %s28_s24 = sadd.s32 1, %s1649_s22  ;;  %p1401_p0 = scmp.ge.s32.totalorder %s1653_s23, 1  ;;  %s1653_s23 = sphi %s1695_s23, %s16_s23   ;;  %s1649_s22 = sphi %s1693_s22, %s2170_s22   ;;  %s1645_s21 = sphi %s1691_s21, %s2169_s21  }
   0x3   : > { %p30_p1 = scmp.ge.s32.totalorder %s28_s24, 2  ;;  %p269_p2 = scmp.lt.s32.totalorder %s1653_s23, 3 }
   0x5   : > { %s2172_s24 = smov (%p30_p1, %s28_s24), 0  ;;  %p270_p3 = pnand %p1401_p0, %p269_p2 }
   0x6   : > { %p326_p4 = scmp.lt.s32.totalorder (!%p270_p3), %s1645_s21, 1 }
   0x7   : > { %273 = sbr.rel (%p270_p3) target bundleno = 1010 (0x3f2), region = 44 }
   0xc   : > { %v1655_v0 = vmov 0   ;;  %v370_v1 = vld [vmem:[%s2164_s2] sm:$0xff]  ;;  %s2174_s21 = smov (!%p326_p4, %s1645_s21), 1  ;;  %vm380_vm0 = vcmask 1043456   ;;  %vm376_vm1 = vcmask 64512   ;;  %vm634_vm2 = vcmask 523264  }
   0xd   : > { %1502 = vset.pattern.permute.xlu0 %v1655_v0  ;;  %s1463_s27 = sshll.u32 %s2174_s21, 4  ;;  %v365_v8 = vld [vmem:[%s2163_s1] sm:$0xf]  ;;  %s1404_s9 = sshll.u32 %s2174_s21, 2 }
   0xe   : > { %373 = vperm.xlu0 %1502, %v370_v1   ;;  %s333_s30 = scalar_lea.vmem %s2162_s0, %s1463_s27  ;;  %s338_s12 = scalar_lea.vmem %s2165_s3, %s1404_s9 }
   0xf   : > { %v366_v2 = vld [vmem:[%s333_s30] sm:$0xff]  ;;  %v367_v3 = vld [vmem:[%s333_s30 + $0x8] sm:$0xff]  ;;  %s1464_s13 = sshll.u32 %s2174_s21, 5  ;;  %s1465_s17 = sshll.u32 %s2174_s21, 8 }
  0x10   : > { %v368_v4 = vpack.c.bf16 %v366_v2, %v366_v2  ;;  %v369_v5 = vpack.c.bf16 %v367_v3, %v367_v3  ;;  %v493_v16 = vld [vmem:[%s338_s12] sm:$0xf]  ;;  %s343_s16 = scalar_lea.vmem %s2166_s4, %s1464_s13  ;;  %s1936_s20 = scalar_lea.vmem %s2167_s5, %s1465_s17 }
  0x11   : > { %v543_v17 = vsel %vm380_vm0, %v493_v16, 0  ;;  %s1949_s26 = scalar_lea.vmem %s2168_s6, %s1465_s17 }
  0x12   : > { %v382_v6 = vsel %vm380_vm0, %v368_v4, 0  ;;  %v385_v7 = vsel %vm380_vm0, %v369_v5, 0  ;;  %1471 = vmatpush.bf16.msra.mxu2 %v543_v17 }
  0x13   : > { %394 = vmatpush.bf16.msra.mxu0 %v382_v6  ;;  %407 = vmatpush.bf16.msra.mxu1 %v385_v7 }
  0x16   : > { %1411 = vmatmul.msk.bf16.vlgmr.msra.gmra.mxu0 %vm376_vm1, %v365_v8  ;;  %1412 = vmatmul.msk.bf16.vlgmr.msra.gmra.mxu1 %vm376_vm1, %v365_v8 }
  0x17   : > { %552 = vmatpush.bf16.msrb.mxu1 %v543_v17 }
  0x80   : > { %v374_v9 = vpop.permute.xlu0 %373 }
  0x93   : > { %v396_v10 = vpop.f32.mrf.mxu0  ;;  %v409_v11 = vpop.f32.mrf.mxu1 }
  0x94   : > { %v397_v12 = vadd.f32 %v396_v10, %v374_v9  ;;  %v410_v13 = vadd.f32 %v409_v11, %v374_v9 }
  0x96   : > { %445 = vxpose.xlu1.b32.start.end [1/1] (short) %v410_v13, 128  ;;  %413 = vxpose.xlu0.b32.start.end [1/1] (short) %v397_v12, 128 }
  0x9b   : > { %v398_v14 = vpop.f32.mrf.mxu0  ;;  %v411_v15 = vpop.f32.mrf.mxu1 }
 0x13a   : > { %v429_v18 = vpop.trf.xlu0  ;;  %v461_v37 = vpop.trf.xlu1 }
 0x142   : > { %v430_v19 = vpop.trf.xlu0  ;;  %v462_v40 = vpop.trf.xlu1 }
 0x143   : > { %v477_v20 = vpack.c.bf16 %v430_v19, %v429_v18  ;;  %v485_v48 = vpack.c.bf16 %v462_v40, %v461_v37 }
 0x145   : > { %1413 = vmatmul.msk.bf16.vlgmr.msrb.gmra.mxu1 %vm376_vm1, %v477_v20 }
 0x14a   : > { %v431_v21 = vpop.trf.xlu0  ;;  %v463_v42 = vpop.trf.xlu1 }
 0x152   : > { %v432_v22 = vpop.trf.xlu0  ;;  %v464_v45 = vpop.trf.xlu1 }
 0x153   : > { %v478_v23 = vpack.c.bf16 %v432_v22, %v431_v21  ;;  %v486_v54 = vpack.c.bf16 %v464_v45, %v463_v42  ;;  %v1470_v22 = vld [vmem:[%s343_s16 + $0x18] sm:$0xff] }
 0x154   : > { %1023 = vmatpush.bf16.msrb.mxu0 %v1470_v22  ;;  %1472 = vmatpush.bf16.msra.mxu3 %v1470_v22 }
 0x155   : > { %1414 = vmatmul.msk.bf16.gmra.mxu1 %vm376_vm1, %v478_v23  ;;  %v1469_v23 = vld [vmem:[%s343_s16 + $0x10] sm:$0xff] }
 0x158   : > { %1024 = vmatpush.bf16.msrb.mxu0 %v1469_v23  ;;  %1473 = vmatpush.bf16.msra.mxu3 %v1469_v23 }
 0x15a   : > { %v433_v24 = vpop.trf.xlu0  ;;  %v465_v47 = vpop.trf.xlu1 }
 0x162   : > { %v434_v25 = vpop.trf.xlu0  ;;  %v466_v52 = vpop.trf.xlu1 }
 0x163   : > { %v479_v26 = vpack.c.bf16 %v434_v25, %v433_v24  ;;  %v487_v61 = vpack.c.bf16 %v466_v52, %v465_v47 }
 0x165   : > { %1415 = vmatmul.msk.bf16.gmra.mxu1 %vm376_vm1, %v479_v26 }
 0x16a   : > { %v435_v27 = vpop.trf.xlu0  ;;  %v467_v56 = vpop.trf.xlu1 }
 0x172   : > { %v436_v28 = vpop.trf.xlu0  ;;  %v468_v59 = vpop.trf.xlu1 }
 0x173   : > { %v480_v29 = vpack.c.bf16 %v436_v28, %v435_v27  ;;  %v488_v3 = vpack.c.bf16 %v468_v59, %v467_v56  ;;  %v1468_v27 = vld [vmem:[%s343_s16 + $0x8] sm:$0xff] }
 0x174   : > { %1025 = vmatpush.bf16.msrb.mxu0 %v1468_v27  ;;  %1474 = vmatpush.bf16.msra.mxu3 %v1468_v27 }
 0x175   : > { %1416 = vmatmul.msk.bf16.gmra.mxu1 %vm376_vm1, %v480_v29  ;;  %v1467_v29 = vld [vmem:[%s343_s16] sm:$0xff] }
 0x178   : > { %1026 = vmatpush.bf16.msrb.mxu0 %v1467_v29  ;;  %1475 = vmatpush.bf16.msra.mxu3 %v1467_v29 }
 0x17a   : > { %v437_v30 = vpop.trf.xlu0  ;;  %v469_v0 = vpop.trf.xlu1 }
 0x182   : > { %v438_v31 = vpop.trf.xlu0  ;;  %v470_v5 = vpop.trf.xlu1 }
 0x183   : > { %v481_v32 = vpack.c.bf16 %v438_v31, %v437_v30  ;;  %v489_v10 = vpack.c.bf16 %v470_v5, %v469_v0 }
 0x185   : > { %1417 = vmatmul.msk.bf16.gmra.mxu1 %vm376_vm1, %v481_v32 }
 0x18a   : > { %v439_v33 = vpop.trf.xlu0  ;;  %v471_v8 = vpop.trf.xlu1 }
 0x192   : > { %v440_v34 = vpop.trf.xlu0  ;;  %v472_v12 = vpop.trf.xlu1 }
 0x193   : > { %v482_v35 = vpack.c.bf16 %v440_v34, %v439_v33  ;;  %v490_v17 = vpack.c.bf16 %v472_v12, %v471_v8 }
 0x195   : > { %1418 = vmatmul.msk.bf16.gmra.mxu1 %vm376_vm1, %v482_v35 }
 0x19a   : > { %v441_v36 = vpop.trf.xlu0  ;;  %v473_v15 = vpop.trf.xlu1 }
 0x1a2   : > { %v442_v38 = vpop.trf.xlu0  ;;  %v474_v21 = vpop.trf.xlu1 }
 0x1a3   : > { %v483_v39 = vpack.c.bf16 %v442_v38, %v441_v36  ;;  %v491_v25 = vpack.c.bf16 %v474_v21, %v473_v15 }
 0x1a5   : > { %1419 = vmatmul.msk.bf16.gmra.mxu1 %vm376_vm1, %v483_v39 }
 0x1aa   : > { %v443_v41 = vpop.trf.xlu0  ;;  %v475_v28 = vpop.trf.xlu1 }
 0x1b2   : > { %v444_v43 = vpop.trf.xlu0  ;;  %v476_v32 = vpop.trf.xlu1 }
 0x1b3   : > { %v484_v44 = vpack.c.bf16 %v444_v43, %v443_v41  ;;  %v492_v33 = vpack.c.bf16 %v476_v32, %v475_v28 }
 0x1b5   : > { %1420 = vmatmul.msk.bf16.vlgmr.msra.gmra.mxu2 %vm376_vm1, %v484_v44 }
 0x1c2   : > { %v1738_v46 = vpop.f32.mrf.mxu1 }
 0x1c3   : > { %v635_v49 = vsel %vm634_vm2, %v1738_v46, -inf }
 0x1c4   : > { %636 = vmax.xlane.f32.xlu2 %v635_v49 }
 0x1c5   : > { %1421 = vmatmul.msk.bf16.gmra.mxu2 %vm376_vm1, %v485_v48 }
 0x1ca   : > { %v1743_v50 = vpop.f32.mrf.mxu1 }
 0x1cb   : > { %v638_v51 = vsel %vm634_vm2, %v1743_v50, -inf }
 0x1cc   : > { %639 = vmax.xlane.f32.xlu2 %v638_v51 }
 0x1d2   : > { %v1747_v53 = vpop.f32.mrf.mxu1 }
 0x1d3   : > { %v641_v55 = vsel %vm634_vm2, %v1747_v53, -inf }
 0x1d4   : > { %642 = vmax.xlane.f32.xlu2 %v641_v55 }
 0x1d5   : > { %1422 = vmatmul.msk.bf16.gmra.mxu2 %vm376_vm1, %v486_v54 }
 0x1da   : > { %v1752_v57 = vpop.f32.mrf.mxu1 }
 0x1db   : > { %v644_v58 = vsel %vm634_vm2, %v1752_v57, -inf }
 0x1dc   : > { %645 = vmax.xlane.f32.xlu0 %v644_v58 }
 0x1e2   : > { %v1756_v60 = vpop.f32.mrf.mxu1 }
 0x1e3   : > { %v647_v62 = vsel %vm634_vm2, %v1756_v60, -inf }
 0x1e4   : > { %648 = vmax.xlane.f32.xlu2 %v647_v62 }
 0x1e5   : > { %1423 = vmatmul.msk.bf16.gmra.mxu2 %vm376_vm1, %v487_v61 }
 0x1ea   : > { %v1761_v63 = vpop.f32.mrf.mxu1 }
 0x1eb   : > { %v650_v1 = vsel %vm634_vm2, %v1761_v63, -inf }
 0x1ec   : > { %651 = vmax.xlane.f32.xlu2 %v650_v1 }
 0x1f2   : > { %v1765_v2 = vpop.f32.mrf.mxu1 }
 0x1f3   : > { %v653_v4 = vsel %vm634_vm2, %v1765_v2, -inf }
 0x1f4   : > { %654 = vmax.xlane.f32.xlu2 %v653_v4 }
 0x1f5   : > { %1424 = vmatmul.msk.bf16.gmra.mxu2 %vm376_vm1, %v488_v3 }
 0x1fa   : > { %v1770_v6 = vpop.f32.mrf.mxu1 }
 0x1fb   : > { %v656_v7 = vsel %vm634_vm2, %v1770_v6, -inf }
 0x1fc   : > { %657 = vmax.xlane.f32.xlu2 %v656_v7 }
 0x202   : > { %v1774_v9 = vpop.f32.mrf.mxu1 }
 0x203   : > { %v659_v11 = vsel %vm634_vm2, %v1774_v9, -inf }
 0x204   : > { %660 = vmax.xlane.f32.xlu2 %v659_v11 }
 0x205   : > { %1425 = vmatmul.msk.bf16.gmra.mxu2 %vm376_vm1, %v489_v10 }
 0x20a   : > { %v1779_v13 = vpop.f32.mrf.mxu1 }
 0x20b   : > { %v662_v14 = vsel %vm634_vm2, %v1779_v13, -inf }
 0x20c   : > { %663 = vmax.xlane.f32.xlu2 %v662_v14 }
 0x212   : > { %v1783_v16 = vpop.f32.mrf.mxu1 }
 0x213   : > { %v665_v18 = vsel %vm634_vm2, %v1783_v16, -inf }
 0x214   : > { %666 = vmax.xlane.f32.xlu2 %v665_v18 }
 0x215   : > { %1426 = vmatmul.msk.bf16.gmra.mxu2 %vm376_vm1, %v490_v17 }
 0x21a   : > { %v1792_v19 = vpop.f32.mrf.mxu1 }
 0x21b   : > { %v668_v20 = vsel %vm634_vm2, %v1792_v19, -inf }
 0x21c   : > { %669 = vmax.xlane.f32.xlu2 %v668_v20 }
 0x222   : > { %v1796_v24 = vpop.f32.mrf.mxu1 }
 0x223   : > { %v671_v26 = vsel %vm634_vm2, %v1796_v24, -inf }
 0x224   : > { %672 = vmax.xlane.f32.xlu2 %v671_v26 }
 0x225   : > { %1427 = vmatmul.msk.bf16.gmra.mxu2 %vm376_vm1, %v491_v25 }
 0x22a   : > { %v1801_v30 = vpop.f32.mrf.mxu1 }
 0x22b   : > { %v674_v31 = vsel %vm634_vm2, %v1801_v30, -inf }
 0x22c   : > { %675 = vmax.xlane.f32.xlu2 %v674_v31 }
 0x235   : > { %1428 = vmatmul.msk.bf16.gmra.mxu2 %vm376_vm1, %v492_v33 }
 0x237   : > { %v637_v34 = vpop.xlane.xlu2 %636 }
 0x238   : > { %v1806_v35 = vpop.f32.mrf.mxu2  ;;  %v731_v36 = vsub.f32 %v1738_v46, %v637_v34 }
 0x239   : > { %v677_v54 = vsel %vm634_vm2, %v1806_v35, -inf }
 0x23a   : > { %v763_v37 = vmul.f32 1.442695, %v731_v36 }
 0x23c   : > { %1503 = vpow2.f32 %v763_v37 }
 0x23f   : > { %v640_v38 = vpop.xlane.xlu2 %639 }
 0x240   : > { %v732_v39 = vsub.f32 %v1743_v50, %v640_v38  ;;  %v1810_v40 = vpop.f32.mrf.mxu2 }
 0x242   : > { %v765_v41 = vmul.f32 1.442695, %v732_v39  ;;  %v1504_v44 = vpop.eup %1503 }
 0x244   : > { %1505 = vpow2.f32 %v765_v41 }
 0x247   : > { %v643_v42 = vpop.xlane.xlu2 %642 }
 0x248   : > { %v1812_v43 = vpop.f32.mrf.mxu2  ;;  %v733_v46 = vsub.f32 %v1747_v53, %v643_v42 }
 0x249   : > { %v683_v45 = vsel %vm634_vm2, %v1812_v43, -inf }
 0x24a   : > { %v1816_v47 = vpop.eup %1505  ;;  %684 = vmax.xlane.f32.xlu1 %v683_v45  ;;  %v767_v49 = vmul.f32 1.442695, %v733_v46 }
 0x24b   : > { %v923_v48 = vpack.c.bf16 %v1816_v47, %v1504_v44 }
 0x24c   : > { %1507 = vpow2.f32 %v767_v49 }
 0x24d   : > { %1445 = vmatmul.msk.bf16.vlgmr.msrb.gmra.mxu0 %vm634_vm2, %v923_v48 }
 0x24f   : > { %v646_v50 = vpop.xlane.xlu0 %645 }
 0x250   : > { %v734_v51 = vsub.f32 %v1752_v57, %v646_v50  ;;  %v1822_v52 = vpop.f32.mrf.mxu2  ;;  %v827_v57 = vsel %vm634_vm2, %v1504_v44, 0.0 }
 0x251   : > { %v686_v55 = vsel %vm634_vm2, %v1822_v52, -inf }
 0x252   : > { %v769_v56 = vmul.f32 1.442695, %v734_v51  ;;  %678 = vmax.xlane.f32.xlu1 %v677_v54  ;;  %687 = vmax.xlane.f32.xlu2 %v686_v55  ;;  %v1508_v61 = vpop.eup %1507 }
 0x253   : > { %v833_v7 = vsel %vm634_vm2, %v1508_v61, 0.0 }
 0x254   : > { %1509 = vpow2.f32 %v769_v56 }
 0x257   : > { %v649_v53 = vpop.xlane.xlu2 %648 }
 0x258   : > { %v735_v58 = vsub.f32 %v1756_v60, %v649_v53  ;;  %v1829_v59 = vpop.f32.mrf.mxu2 }
 0x259   : > { %v689_v62 = vsel %vm634_vm2, %v1829_v59, -inf }
 0x25a   : > { %v1834_v0 = vpop.eup %1509  ;;  %828 = vadd.xlane.f32.xlu1 %v827_v57  ;;  %690 = vmax.xlane.f32.xlu2 %v689_v62  ;;  %v771_v3 = vmul.f32 1.442695, %v735_v58 }
 0x25b   : > { %v924_v1 = vpack.c.bf16 %v1834_v0, %v1508_v61 }
 0x25c   : > { %1511 = vpow2.f32 %v771_v3 }
 0x25d   : > { %1446 = vmatmul.msk.bf16.gmra.mxu0 %vm634_vm2, %v924_v1 }
 0x25f   : > { %v652_v4 = vpop.xlane.xlu2 %651 }
 0x260   : > { %v736_v60 = vsub.f32 %v1761_v63, %v652_v4  ;;  %v1839_v5 = vpop.f32.mrf.mxu2 }
 0x261   : > { %v692_v8 = vsel %vm634_vm2, %v1839_v5, -inf }
 0x262   : > { %v773_v10 = vmul.f32 1.442695, %v736_v60  ;;  %834 = vadd.xlane.f32.xlu1 %v833_v7  ;;  %693 = vmax.xlane.f32.xlu2 %v692_v8  ;;  %v1512_v11 = vpop.eup %1511 }
 0x263   : > { %v839_v17 = vsel %vm634_vm2, %v1512_v11, 0.0 }
 0x264   : > { %1513 = vpow2.f32 %v773_v10 }
 0x267   : > { %v655_v12 = vpop.xlane.xlu2 %654 }
 0x268   : > { %v737_v14 = vsub.f32 %v1765_v2, %v655_v12  ;;  %v1845_v15 = vpop.f32.mrf.mxu2 }
 0x269   : > { %v695_v63 = vsel %vm634_vm2, %v1845_v15, -inf }
 0x26a   : > { %v1850_v18 = vpop.eup %1513  ;;  %v775_v20 = vmul.f32 1.442695, %v737_v14  ;;  %840 = vadd.xlane.f32.xlu1 %v839_v17  ;;  %696 = vmax.xlane.f32.xlu2 %v695_v63 }
 0x26b   : > { %v925_v21 = vpack.c.bf16 %v1850_v18, %v1512_v11 }
 0x26c   : > { %1515 = vpow2.f32 %v775_v20 }
 0x26d   : > { %1447 = vmatmul.msk.bf16.gmra.mxu0 %vm634_vm2, %v925_v21 }
 0x26f   : > { %v658_v22 = vpop.xlane.xlu2 %657 }
 0x270   : > { %v738_v2 = vsub.f32 %v1770_v6, %v658_v22  ;;  %v1855_v23 = vpop.f32.mrf.mxu2 }
 0x271   : > { %v698_v25 = vsel %vm634_vm2, %v1855_v23, -inf }
 0x272   : > { %v1516_v26 = vpop.eup %1515  ;;  %v777_v27 = vmul.f32 1.442695, %v738_v2  ;;  %699 = vmax.xlane.f32.xlu2 %v698_v25 }
 0x273   : > { %v845_v28 = vsel %vm634_vm2, %v1516_v26, 0.0 }
 0x274   : > { %1517 = vpow2.f32 %v777_v27  ;;  %846 = vadd.xlane.f32.xlu1 %v845_v28 }
 0x277   : > { %v661_v29 = vpop.xlane.xlu2 %660 }
 0x278   : > { %v739_v31 = vsub.f32 %v1774_v9, %v661_v29  ;;  %v1861_v32 = vpop.f32.mrf.mxu2 }
 0x279   : > { %v701_v6 = vsel %vm634_vm2, %v1861_v32, -inf }
 0x27a   : > { %v1865_v33 = vpop.eup %1517  ;;  %v779_v34 = vmul.f32 1.442695, %v739_v31  ;;  %702 = vmax.xlane.f32.xlu2 %v701_v6 }
 0x27b   : > { %v926_v36 = vpack.c.bf16 %v1865_v33, %v1516_v26 }
 0x27c   : > { %1519 = vpow2.f32 %v779_v34 }
 0x27d   : > { %1448 = vmatmul.msk.bf16.gmra.mxu0 %vm634_vm2, %v926_v36 }
 0x27f   : > { %v664_v37 = vpop.xlane.xlu2 %663 }
 0x280   : > { %v740_v38 = vsub.f32 %v1779_v13, %v664_v37  ;;  %v1870_v39 = vpop.f32.mrf.mxu2 }
 0x281   : > { %v704_v9 = vsel %vm634_vm2, %v1870_v39, -inf }
 0x282   : > { %v1520_v41 = vpop.eup %1519  ;;  %v781_v42 = vmul.f32 1.442695, %v740_v38  ;;  %705 = vmax.xlane.f32.xlu2 %v704_v9 }
 0x283   : > { %v851_v44 = vsel %vm634_vm2, %v1520_v41, 0.0 }
 0x284   : > { %1521 = vpow2.f32 %v781_v42  ;;  %852 = vadd.xlane.f32.xlu1 %v851_v44 }
 0x287   : > { %v667_v45 = vpop.xlane.xlu2 %666 }
 0x288   : > { %v741_v46 = vsub.f32 %v1783_v16, %v667_v45  ;;  %v1876_v48 = vpop.f32.mrf.mxu2 }
 0x289   : > { %v707_v13 = vsel %vm634_vm2, %v1876_v48, -inf }
 0x28a   : > { %v1880_v49 = vpop.eup %1521  ;;  %v783_v50 = vmul.f32 1.442695, %v741_v46  ;;  %708 = vmax.xlane.f32.xlu2 %v707_v13  ;;  %v830_v13 = vsel %vm634_vm2, %v1816_v47, 0.0 }
 0x28b   : > { %v927_v51 = vpack.c.bf16 %v1880_v49, %v1520_v41 }
 0x28c   : > { %1523 = vpow2.f32 %v783_v50 }
 0x28d   : > { %1449 = vmatmul.msk.bf16.gmra.mxu0 %vm634_vm2, %v927_v51 }
 0x28f   : > { %v670_v54 = vpop.xlane.xlu2 %669 }
 0x290   : > { %v742_v55 = vsub.f32 %v1792_v19, %v670_v54  ;;  %v1885_v56 = vpop.f32.mrf.mxu2 }
 0x291   : > { %v710_v16 = vsel %vm634_vm2, %v1885_v56, -inf }
 0x292   : > { %v1524_v53 = vpop.eup %1523  ;;  %v785_v58 = vmul.f32 1.442695, %v742_v55  ;;  %711 = vmax.xlane.f32.xlu2 %v710_v16  ;;  %v1172_v55 = vld [vmem:[%s1936_s20] sm:$0xff] }
 0x293   : > { %v857_v61 = vsel %vm634_vm2, %v1524_v53, 0.0 }
 0x294   : > { %1525 = vpow2.f32 %v785_v58  ;;  %858 = vadd.xlane.f32.xlu1 %v857_v61 }
 0x297   : > { %v673_v57 = vpop.xlane.xlu2 %672 }
 0x298   : > { %v743_v62 = vsub.f32 %v1796_v24, %v673_v57  ;;  %v1891_v1 = vpop.f32.mrf.mxu2 }
 0x299   : > { %v713_v19 = vsel %vm634_vm2, %v1891_v1, -inf }
 0x29a   : > { %v1895_v3 = vpop.eup %1525  ;;  %v787_v4 = vmul.f32 1.442695, %v743_v62  ;;  %714 = vmax.xlane.f32.xlu2 %v713_v19  ;;  %v836_v62 = vsel %vm634_vm2, %v1834_v0, 0.0  ;;  %v842_v0 = vsel %vm634_vm2, %v1850_v18, 0.0  ;;  %v848_v18 = vsel %vm634_vm2, %v1865_v33, 0.0 }
 0x29b   : > { %v928_v60 = vpack.c.bf16 %v1895_v3, %v1524_v53 }
 0x29c   : > { %1527 = vpow2.f32 %v787_v4 }
 0x29d   : > { %1450 = vmatmul.msk.bf16.gmra.mxu0 %vm634_vm2, %v928_v60  ;;  %v1174_v60 = vld [vmem:[%s1936_s20 + $0x10] sm:$0xff] }
 0x29f   : > { %v676_v7 = vpop.xlane.xlu2 %675 }
 0x2a0   : > { %v744_v8 = vsub.f32 %v1801_v30, %v676_v7  ;;  %v1900_v10 = vpop.f32.mrf.mxu2 }
 0x2a1   : > { %v716_v24 = vsel %vm634_vm2, %v1900_v10, -inf }
 0x2a2   : > { %v1528_v11 = vpop.eup %1527  ;;  %v789_v12 = vmul.f32 1.442695, %v744_v8  ;;  %717 = vmax.xlane.f32.xlu2 %v716_v24 }
 0x2a3   : > { %v863_v14 = vsel %vm634_vm2, %v1528_v11, 0.0 }
 0x2a4   : > { %1529 = vpow2.f32 %v789_v12  ;;  %864 = vadd.xlane.f32.xlu0 %v863_v14 }
 0x2a8   : > { %v1905_v17 = vpop.f32.mrf.mxu2 }
 0x2a9   : > { %v719_v63 = vsel %vm634_vm2, %v1905_v17, -inf }
 0x2aa   : > { %v1530_v20 = vpop.eup %1529  ;;  %720 = vmax.xlane.f32.xlu2 %v719_v63 }
 0x2ab   : > { %v866_v30 = vsel %vm634_vm2, %v1530_v20, 0.0  ;;  %v929_v21 = vpack.c.bf16 %v1530_v20, %v1528_v11 }
 0x2ac   : > { %867 = vadd.xlane.f32.xlu1 %v866_v30 }
 0x2ad   : > { %1451 = vmatmul.msk.bf16.gmra.mxu0 %vm634_vm2, %v929_v21 }
 0x2b0   : > { %v1911_v22 = vpop.f32.mrf.mxu2 }
 0x2b1   : > { %v722_v2 = vsel %vm634_vm2, %v1911_v22, -inf }
 0x2b2   : > { %723 = vmax.xlane.f32.xlu2 %v722_v2 }
 0x2b8   : > { %v1915_v25 = vpop.f32.mrf.mxu2 }
 0x2b9   : > { %v725_v26 = vsel %vm634_vm2, %v1915_v25, -inf }
 0x2ba   : > { %726 = vmax.xlane.f32.xlu2 %v725_v26 }
 0x2bd   : > { %v685_v27 = vpop.xlane.xlu1 %684 }
 0x2be   : > { %v747_v28 = vsub.f32 %v1812_v43, %v685_v27  ;;  %v680_v43 = vsel %vm634_vm2, %v1810_v40, -inf }
 0x2c0   : > { %v795_v29 = vmul.f32 1.442695, %v747_v28  ;;  %v1920_v31 = vpop.f32.mrf.mxu2 }
 0x2c1   : > { %v728_v6 = vsel %vm634_vm2, %v1920_v31, -inf }
 0x2c2   : > { %1531 = vpow2.f32 %v795_v29  ;;  %729 = vmax.xlane.f32.xlu2 %v728_v6  ;;  %v1176_v29 = vld [vmem:[%s1936_s20 + $0x20] sm:$0xff] }
 0x2c5   : > { %v1924_v34 = vpop.xlane.xlu1 %678  ;;  %v688_v36 = vpop.xlane.xlu2 %687 }
 0x2c6   : > { %v748_v37 = vsub.f32 %v1822_v52, %v688_v36 }
 0x2c8   : > { %v1532_v38 = vpop.eup %1531  ;;  %v797_v9 = vmul.f32 1.442695, %v748_v37 }
 0x2c9   : > { %v875_v41 = vsel %vm634_vm2, %v1532_v38, 0.0 }
 0x2ca   : > { %v1028_v42 = vpop.f32.mrf.mxu0  ;;  %876 = vadd.xlane.f32.xlu1 %v875_v41  ;;  %681 = vmax.xlane.f32.xlu2 %v680_v43  ;;  %1533 = vpow2.f32 %v797_v9 }
 0x2cd   : > { %v829_v44 = vpop.xlane.xlu1 %828  ;;  %v691_v45 = vpop.xlane.xlu2 %690 }
 0x2ce   : > { %1535 = vrcp.f32 %v829_v44  ;;  %v749_v52 = vsub.f32 %v1829_v59, %v691_v45 }
 0x2d0   : > { %v1931_v46 = vpop.eup %1533  ;;  %v799_v53 = vmul.f32 1.442695, %v749_v52 }
 0x2d1   : > { %v931_v51 = vpack.c.bf16 %v1931_v46, %v1532_v38 }
 0x2d2   : > { %v1941_v50 = vpop.f32.mrf.mxu0  ;;  %831 = vadd.xlane.f32.xlu2 %v830_v13 }
 0x2d3   : > { %1453 = vmatmul.msk.bf16.vlgmr.msra.gmra.mxu3 %vm634_vm2, %v931_v51  ;;  %v860_v51 = vsel %vm634_vm2, %v1895_v3, 0.0 }
 0x2d4   : > { %v1536_v54 = vpop.eup %1535 }
 0x2d5   : > { %v1140_v16 = vmul.f32 %v1536_v54, %v1028_v42  ;;  %v835_v58 = vpop.xlane.xlu1 %834  ;;  %v694_v61 = vpop.xlane.xlu2 %693  ;;  %v854_v42 = vsel %vm634_vm2, %v1880_v49, 0.0 }
 0x2d6   : > { %1537 = vrcp.f32 %v835_v58  ;;  %v750_v47 = vsub.f32 %v1839_v5, %v694_v61 }
 0x2d7   : > { %v1204_v59 = vadd.f32 %v1172_v55, %v1140_v16  ;;  %1539 = vpow2.f32 %v799_v53  ;;  %v1178_v16 = vld [vmem:[%s1936_s20 + $0x30] sm:$0xff] }
 0x2d8   : > { %v801_v57 = vmul.f32 1.442695, %v750_v47 }
 0x2d9   : > { %1236 = vst.msk [vmem:[%s1949_s26] sm:$0xff] %vm376_vm1, %v1204_v59 }
 0x2da   : > { %1541 = vpow2.f32 %v801_v57  ;;  %v1033_v19 = vpop.f32.mrf.mxu0  ;;  %837 = vadd.xlane.f32.xlu2 %v836_v62 }
 0x2dc   : > { %v1538_v4 = vpop.eup %1537 }
 0x2dd   : > { %v1142_v7 = vmul.f32 %v1538_v4, %v1033_v19  ;;  %v697_v8 = vpop.xlane.xlu2 %696  ;;  %v1957_v24 = vpop.eup %1539 }
 0x2de   : > { %v841_v12 = vpop.xlane.xlu1 %840  ;;  %v751_v14 = vsub.f32 %v1845_v15, %v697_v8 }
 0x2df   : > { %v1206_v11 = vadd.f32 %v1174_v60, %v1142_v7  ;;  %1543 = vrcp.f32 %v841_v12  ;;  %v1180_v12 = vld [vmem:[%s1936_s20 + $0x40] sm:$0xff] }
 0x2e0   : > { %v1542_v5 = vpop.eup %1541  ;;  %v803_v21 = vmul.f32 1.442695, %v751_v14 }
 0x2e1   : > { %1238 = vst.msk [vmem:[%s1949_s26 + $0x10] sm:$0xff] %vm376_vm1, %v1206_v11  ;;  %v884_v63 = vsel %vm634_vm2, %v1542_v5, 0.0  ;;  %v932_v20 = vpack.c.bf16 %v1542_v5, %v1957_v24 }
 0x2e2   : > { %885 = vadd.xlane.f32.xlu1 %v884_v63  ;;  %v1966_v30 = vpop.f32.mrf.mxu0  ;;  %843 = vadd.xlane.f32.xlu2 %v842_v0  ;;  %1545 = vpow2.f32 %v803_v21 }
 0x2e3   : > { %1454 = vmatmul.msk.bf16.gmra.mxu3 %vm634_vm2, %v932_v20 }
 0x2e5   : > { %v700_v2 = vpop.xlane.xlu2 %699  ;;  %v1544_v27 = vpop.eup %1543 }
 0x2e6   : > { %v752_v15 = vsub.f32 %v1855_v23, %v700_v2  ;;  %v745_v23 = vsub.f32 %v1806_v35, %v1924_v34 }
 0x2e7   : > { %v847_v33 = vpop.xlane.xlu1 %846 }
 0x2e8   : > { %v805_v26 = vmul.f32 1.442695, %v752_v15  ;;  %v1546_v9 = vpop.eup %1545 }
 0x2ea   : > { %1547 = vpow2.f32 %v805_v26  ;;  %v1038_v28 = vpop.f32.mrf.mxu0  ;;  %849 = vadd.xlane.f32.xlu2 %v848_v18 }
 0x2eb   : > { %v1144_v6 = vmul.f32 %v1544_v27, %v1038_v28 }
 0x2ed   : > { %v1208_v36 = vadd.f32 %v1176_v29, %v1144_v6  ;;  %v703_v37 = vpop.xlane.xlu2 %702 }
 0x2ee   : > { %v753_v38 = vsub.f32 %v1861_v32, %v703_v37  ;;  %v791_v32 = vmul.f32 1.442695, %v745_v23 }
 0x2ef   : > { %1240 = vst.msk [vmem:[%s1949_s26 + $0x20] sm:$0xff] %vm376_vm1, %v1208_v36 }
 0x2f0   : > { %v1976_v41 = vpop.eup %1547  ;;  %v807_v43 = vmul.f32 1.442695, %v753_v38  ;;  %v1182_v38 = vld [vmem:[%s1936_s20 + $0x50] sm:$0xff] }
 0x2f1   : > { %v933_v44 = vpack.c.bf16 %v1976_v41, %v1546_v9 }
 0x2f2   : > { %1549 = vpow2.f32 %v807_v43  ;;  %v1983_v45 = vpop.f32.mrf.mxu0  ;;  %855 = vadd.xlane.f32.xlu2 %v854_v42 }
 0x2f3   : > { %1551 = vrcp.f32 %v847_v33  ;;  %1455 = vmatmul.msk.bf16.gmra.mxu3 %vm634_vm2, %v933_v44 }
 0x2f4   : > { %1553 = vpow2.f32 %v791_v32 }
 0x2f5   : > { %v706_v52 = vpop.xlane.xlu2 %705 }
 0x2f6   : > { %v754_v13 = vsub.f32 %v1870_v39, %v706_v52 }
 0x2f7   : > { %v853_v59 = vpop.xlane.xlu1 %852 }
 0x2f8   : > { %v1550_v35 = vpop.eup %1549  ;;  %v809_v34 = vmul.f32 1.442695, %v754_v13 }
 0x2f9   : > { %v893_v49 = vsel %vm634_vm2, %v1550_v35, 0.0  ;;  %v1552_v54 = vpop.eup %1551 }
 0x2fa   : > { %1555 = vpow2.f32 %v809_v34  ;;  %894 = vadd.xlane.f32.xlu1 %v893_v49  ;;  %v1043_v55 = vpop.f32.mrf.mxu0  ;;  %861 = vadd.xlane.f32.xlu2 %v860_v51  ;;  %v1991_v47 = vpop.eup %1553 }
 0x2fb   : > { %v1146_v53 = vmul.f32 %v1552_v54, %v1043_v55  ;;  %v869_v3 = vsel %vm634_vm2, %v1991_v47, 0.0  ;;  %1557 = vrcp.f32 %v853_v59 }
 0x2fd   : > { %v1210_v58 = vadd.f32 %v1178_v16, %v1146_v53  ;;  %v709_v61 = vpop.xlane.xlu2 %708 }
 0x2fe   : > { %v755_v57 = vsub.f32 %v1876_v48, %v709_v61  ;;  %v878_v48 = vsel %vm634_vm2, %v1931_v46, 0.0  ;;  %v887_v46 = vsel %vm634_vm2, %v1546_v9, 0.0 }
 0x2ff   : > { %1242 = vst.msk [vmem:[%s1949_s26 + $0x30] sm:$0xff] %vm376_vm1, %v1210_v58  ;;  %v1184_v58 = vld [vmem:[%s1936_s20 + $0x60] sm:$0xff] }
 0x300   : > { %v1556_v39 = vpop.eup %1555  ;;  %v811_v4 = vmul.f32 1.442695, %v755_v57 }
 0x301   : > { %v934_v62 = vpack.c.bf16 %v1556_v39, %v1550_v35  ;;  %v1558_v11 = vpop.eup %1557  ;;  %v896_v6 = vsel %vm634_vm2, %v1556_v39, 0.0 }
 0x302   : > { %v1998_v19 = vpop.f32.mrf.mxu0  ;;  %870 = vadd.xlane.f32.xlu2 %v869_v3  ;;  %1559 = vpow2.f32 %v811_v4 }
 0x303   : > { %1456 = vmatmul.msk.bf16.gmra.mxu3 %vm634_vm2, %v934_v62 }
 0x305   : > { %v712_v60 = vpop.xlane.xlu2 %711 }
 0x306   : > { %v756_v7 = vsub.f32 %v1885_v56, %v712_v60 }
 0x307   : > { %v859_v2 = vpop.xlane.xlu1 %858 }
 0x308   : > { %v813_v8 = vmul.f32 1.442695, %v756_v7  ;;  %v2005_v20 = vpop.eup %1559  ;;  %v1185_v7 = vld [vmem:[%s1936_s20 + $0x68] sm:$0xff] }
 0x30a   : > { %1561 = vpow2.f32 %v813_v8  ;;  %v1048_v5 = vpop.f32.mrf.mxu0  ;;  %879 = vadd.xlane.f32.xlu2 %v878_v48 }
 0x30b   : > { %v1148_v14 = vmul.f32 %v1558_v11, %v1048_v5  ;;  %1563 = vrcp.f32 %v859_v2 }
 0x30d   : > { %v1212_v63 = vadd.f32 %v1180_v12, %v1148_v14  ;;  %v715_v0 = vpop.xlane.xlu2 %714 }
 0x30e   : > { %v757_v56 = vsub.f32 %v1891_v1, %v715_v0 }
 0x30f   : > { %1244 = vst.msk [vmem:[%s1949_s26 + $0x40] sm:$0xff] %vm376_vm1, %v1212_v63 }
 0x310   : > { %v1562_v21 = vpop.eup %1561  ;;  %v815_v27 = vmul.f32 1.442695, %v757_v56 }
 0x311   : > { %v902_v15 = vsel %vm634_vm2, %v1562_v21, 0.0  ;;  %v935_v26 = vpack.c.bf16 %v1562_v21, %v2005_v20  ;;  %v1564_v36 = vpop.eup %1563 }
 0x312   : > { %903 = vadd.xlane.f32.xlu1 %v902_v15  ;;  %v2013_v18 = vpop.f32.mrf.mxu0  ;;  %888 = vadd.xlane.f32.xlu2 %v887_v46  ;;  %1565 = vpow2.f32 %v815_v27 }
 0x313   : > { %1457 = vmatmul.msk.bf16.gmra.mxu3 %vm634_vm2, %v935_v26 }
 0x315   : > { %v718_v28 = vpop.xlane.xlu2 %717 }
 0x316   : > { %v758_v1 = vsub.f32 %v1900_v10, %v718_v28  ;;  %v1173_v28 = vld [vmem:[%s1936_s20 + $0x8] sm:$0xff] }
 0x317   : > { %v865_v32 = vpop.xlane.xlu0 %864 }
 0x318   : > { %v817_v29 = vmul.f32 1.442695, %v758_v1  ;;  %v1566_v33 = vpop.eup %1565 }
 0x319   : > { %v905_v52 = vsel %vm634_vm2, %v1566_v33, 0.0 }
 0x31a   : > { %1567 = vpow2.f32 %v817_v29  ;;  %v1053_v37 = vpop.f32.mrf.mxu0  ;;  %897 = vadd.xlane.f32.xlu2 %v896_v6 }
 0x31b   : > { %v1150_v9 = vmul.f32 %v1564_v36, %v1053_v37  ;;  %v881_v37 = vsel %vm634_vm2, %v1957_v24, 0.0  ;;  %v890_v24 = vsel %vm634_vm2, %v1976_v41, 0.0 }
 0x31d   : > { %v1214_v23 = vadd.f32 %v1182_v38, %v1150_v9  ;;  %v721_v43 = vpop.xlane.xlu2 %720  ;;  %v1175_v38 = vld [vmem:[%s1936_s20 + $0x18] sm:$0xff] }
 0x31e   : > { %v759_v42 = vsub.f32 %v1905_v17, %v721_v43 }
 0x31f   : > { %1246 = vst.msk [vmem:[%s1949_s26 + $0x50] sm:$0xff] %vm376_vm1, %v1214_v23  ;;  %v868_v54 = vpop.xlane.xlu1 %867 }
 0x320   : > { %v2022_v44 = vpop.eup %1567  ;;  %v819_v10 = vmul.f32 1.442695, %v759_v42  ;;  %v1188_v42 = vld [vmem:[%s1936_s20 + $0x80] sm:$0xff] }
 0x321   : > { %v936_v13 = vpack.c.bf16 %v2022_v44, %v1566_v33 }
 0x322   : > { %1569 = vpow2.f32 %v819_v10  ;;  %v2026_v35 = vpop.f32.mrf.mxu0  ;;  %906 = vadd.xlane.f32.xlu2 %v905_v52 }
 0x323   : > { %1571 = vrcp.f32 %v865_v32  ;;  %1458 = vmatmul.msk.bf16.gmra.mxu3 %vm634_vm2, %v936_v13 }
 0x325   : > { %v724_v17 = vpop.xlane.xlu2 %723 }
 0x326   : > { %v760_v34 = vsub.f32 %v1911_v22, %v724_v17 }
 0x328   : > { %v1570_v49 = vpop.eup %1569  ;;  %v821_v51 = vmul.f32 1.442695, %v760_v34 }
 0x329   : > { %v911_v55 = vsel %vm634_vm2, %v1570_v49, 0.0  ;;  %v1572_v16 = vpop.eup %1571 }
 0x32a   : > { %1573 = vpow2.f32 %v821_v51  ;;  %912 = vadd.xlane.f32.xlu1 %v911_v55  ;;  %v1058_v53 = vpop.f32.mrf.mxu0  ;;  %v899_v51 = vsel %vm634_vm2, %v2005_v20, 0.0  ;;  %v908_v20 = vsel %vm634_vm2, %v2022_v44, 0.0 }
 0x32b   : > { %v1152_v61 = vmul.f32 %v1572_v16, %v1058_v53  ;;  %1575 = vrcp.f32 %v868_v54  ;;  %v1179_v54 = vld [vmem:[%s1936_s20 + $0x38] sm:$0xff] }
 0x32d   : > { %v1216_v39 = vadd.f32 %v1184_v58, %v1152_v61  ;;  %v727_v59 = vpop.xlane.xlu2 %726 }
 0x32e   : > { %v761_v22 = vsub.f32 %v1915_v25, %v727_v59 }
 0x32f   : > { %1248 = vst.msk [vmem:[%s1949_s26 + $0x60] sm:$0xff] %vm376_vm1, %v1216_v39  ;;  %v1181_v39 = vld [vmem:[%s1936_s20 + $0x48] sm:$0xff] }
 0x330   : > { %v1574_v57 = vpop.eup %1573  ;;  %v823_v48 = vmul.f32 1.442695, %v761_v22 }
 0x331   : > { %v914_v3 = vsel %vm634_vm2, %v1574_v57, 0.0  ;;  %v937_v62 = vpack.c.bf16 %v1574_v57, %v1570_v49  ;;  %v1576_v4 = vpop.eup %1575 }
 0x332   : > { %v1060_v60 = vpop.f32.mrf.mxu0  ;;  %915 = vadd.xlane.f32.xlu2 %v914_v3  ;;  %1577 = vpow2.f32 %v823_v48 }
 0x333   : > { %v1153_v8 = vmul.f32 %v1576_v4, %v1060_v60  ;;  %1459 = vmatmul.msk.bf16.gmra.mxu3 %vm634_vm2, %v937_v62  ;;  %v1191_v62 = vld [vmem:[%s1936_s20 + $0x98] sm:$0xff] }
 0x335   : > { %v1217_v11 = vadd.f32 %v1185_v7, %v1153_v8  ;;  %v730_v5 = vpop.xlane.xlu2 %729 }
 0x336   : > { %v762_v12 = vsub.f32 %v1920_v31, %v730_v5 }
 0x337   : > { %1249 = vst.msk [vmem:[%s1949_s26 + $0x68] sm:$0xff] %vm376_vm1, %v1217_v11 }
 0x338   : > { %v825_v14 = vmul.f32 1.442695, %v762_v12  ;;  %v2042_v0 = vpop.eup %1577 }
 0x339   : > { %v917_v44 = vsel %vm634_vm2, %v2042_v0, 0.0 }
 0x33a   : > { %1579 = vpow2.f32 %v825_v14 }
 0x33d   : > { %v682_v25 = vpop.xlane.xlu2 %681  ;;  %v877_v6 = vpop.xlane.xlu1 %876 }
 0x33e   : > { %v746_v63 = vsub.f32 %v1810_v40, %v682_v25 }
 0x340   : > { %v1580_v21 = vpop.eup %1579  ;;  %v793_v56 = vmul.f32 1.442695, %v746_v63 }
 0x341   : > { %v920_v2 = vsel %vm634_vm2, %v1580_v21, 0.0  ;;  %v938_v15 = vpack.c.bf16 %v1580_v21, %v2042_v0  ;;  %v1189_v0 = vld [vmem:[%s1936_s20 + $0x88] sm:$0xff] }
 0x342   : > { %1581 = vpow2.f32 %v793_v56  ;;  %921 = vadd.xlane.f32.xlu1 %v920_v2 }
 0x343   : > { %1460 = vmatmul.msk.bf16.gmra.mxu3 %vm634_vm2, %v938_v15 }
 0x345   : > { %v832_v31 = vpop.xlane.xlu2 %831 }
 0x346   : > { %1583 = vrcp.f32 %v832_v31  ;;  %v1194_v31 = vld [vmem:[%s1936_s20 + $0xb0] sm:$0xff] }
 0x348   : > { %v1582_v46 = vpop.eup %1581 }
 0x349   : > { %v872_v26 = vsel %vm634_vm2, %v1582_v46, 0.0  ;;  %v930_v40 = vpack.c.bf16 %v1582_v46, %v1991_v47 }
 0x34a   : > { %873 = vadd.xlane.f32.xlu0 %v872_v26 }
 0x34b   : > { %1452 = vmatmul.msk.bf16.gmra.mxu0 %vm634_vm2, %v930_v40 }
 0x34c   : > { %v1584_v27 = vpop.eup %1583 }
 0x34d   : > { %v1141_v1 = vmul.f32 %v1584_v27, %v1941_v50  ;;  %v838_v29 = vpop.xlane.xlu2 %837  ;;  %v1192_v27 = vld [vmem:[%s1936_s20 + $0xa0] sm:$0xff] }
 0x34e   : > { %1585 = vrcp.f32 %v838_v29 }
 0x34f   : > { %v1205_v36 = vadd.f32 %v1173_v28, %v1141_v1  ;;  %1587 = vrcp.f32 %v877_v6 }
 0x351   : > { %1237 = vst.msk [vmem:[%s1949_s26 + $0x8] sm:$0xff] %vm376_vm1, %v1205_v36 }
 0x352   : > { %882 = vadd.xlane.f32.xlu0 %v881_v37  ;;  %v1195_v37 = vld [vmem:[%s1936_s20 + $0xb8] sm:$0xff] }
 0x354   : > { %v1586_v47 = vpop.eup %1585 }
 0x355   : > { %v1143_v9 = vmul.f32 %v1586_v47, %v1966_v30  ;;  %v844_v50 = vpop.xlane.xlu2 %843  ;;  %v1588_v23 = vpop.eup %1587  ;;  %v1177_v30 = vld [vmem:[%s1936_s20 + $0x28] sm:$0xff] }
 0x356   : > { %1589 = vrcp.f32 %v844_v50  ;;  %v1068_v33 = vpop.f32.mrf.mxu3  ;;  %v886_v53 = vpop.xlane.xlu1 %885 }
 0x357   : > { %v1207_v43 = vadd.f32 %v1175_v38, %v1143_v9  ;;  %v1156_v10 = vmul.f32 %v1588_v23, %v1068_v33 }
 0x359   : > { %1239 = vst.msk [vmem:[%s1949_s26 + $0x18] sm:$0xff] %vm376_vm1, %v1207_v43  ;;  %v1220_v32 = vadd.f32 %v1188_v42, %v1156_v10  ;;  %v1197_v42 = vld [vmem:[%s1936_s20 + $0xc8] sm:$0xff] }
 0x35a   : > { %891 = vadd.xlane.f32.xlu0 %v890_v24 }
 0x35b   : > { %1252 = vst.msk [vmem:[%s1949_s26 + $0x80] sm:$0xff] %vm376_vm1, %v1220_v32 }
 0x35c   : > { %v1590_v52 = vpop.eup %1589 }
 0x35d   : > { %v850_v13 = vpop.xlane.xlu2 %849  ;;  %v1145_v17 = vmul.f32 %v1590_v52, %v1983_v45 }
 0x35e   : > { %1591 = vrcp.f32 %v850_v13  ;;  %v1070_v34 = vpop.f32.mrf.mxu3 }
 0x35f   : > { %v1209_v49 = vadd.f32 %v1177_v30, %v1145_v17  ;;  %v1198_v30 = vld [vmem:[%s1936_s20 + $0xd0] sm:$0xff] }
 0x361   : > { %1241 = vst.msk [vmem:[%s1949_s26 + $0x28] sm:$0xff] %vm376_vm1, %v1209_v49 }
 0x362   : > { %900 = vadd.xlane.f32.xlu0 %v899_v51 }
 0x364   : > { %v1592_v41 = vpop.eup %1591 }
 0x365   : > { %v1147_v55 = vmul.f32 %v1592_v41, %v1998_v19  ;;  %v856_v16 = vpop.xlane.xlu2 %855 }
 0x366   : > { %1593 = vrcp.f32 %v856_v16  ;;  %v2073_v58 = vpop.f32.mrf.mxu3 }
 0x367   : > { %v1211_v45 = vadd.f32 %v1179_v54, %v1147_v55  ;;  %1595 = vrcp.f32 %v886_v53  ;;  %v1200_v55 = vld [vmem:[%s1936_s20 + $0xe0] sm:$0xff] }
 0x369   : > { %1243 = vst.msk [vmem:[%s1949_s26 + $0x38] sm:$0xff] %vm376_vm1, %v1211_v45 }
 0x36a   : > { %909 = vadd.xlane.f32.xlu0 %v908_v20 }
 0x36c   : > { %v1594_v61 = vpop.eup %1593 }
 0x36d   : > { %v1149_v19 = vmul.f32 %v1594_v61, %v2013_v18  ;;  %v862_v59 = vpop.xlane.xlu2 %861  ;;  %v1596_v57 = vpop.eup %1595  ;;  %v1183_v18 = vld [vmem:[%s1936_s20 + $0x58] sm:$0xff] }
 0x36e   : > { %1597 = vrcp.f32 %v862_v59  ;;  %v1075_v3 = vpop.f32.mrf.mxu3  ;;  %v895_v14 = vpop.xlane.xlu1 %894 }
 0x36f   : > { %v1213_v22 = vadd.f32 %v1181_v39, %v1149_v19  ;;  %v1159_v4 = vmul.f32 %v1596_v57, %v1075_v3  ;;  %v1201_v39 = vld [vmem:[%s1936_s20 + $0xe8] sm:$0xff] }
 0x371   : > { %1245 = vst.msk [vmem:[%s1949_s26 + $0x48] sm:$0xff] %vm376_vm1, %v1213_v22  ;;  %v1223_v60 = vadd.f32 %v1191_v62, %v1159_v4 }
 0x372   : > { %918 = vadd.xlane.f32.xlu0 %v917_v44  ;;  %v1186_v44 = vld [vmem:[%s1936_s20 + $0x70] sm:$0xff] }
 0x373   : > { %1255 = vst.msk [vmem:[%s1949_s26 + $0x98] sm:$0xff] %vm376_vm1, %v1223_v60 }
 0x374   : > { %v1598_v7 = vpop.eup %1597 }
 0x375   : > { %v2089_v8 = vpop.xlane.xlu2 %870  ;;  %v1151_v48 = vmul.f32 %v1598_v7, %v2026_v35 }
 0x376   : > { %v1078_v11 = vpop.f32.mrf.mxu3 }
 0x377   : > { %v1215_v5 = vadd.f32 %v1183_v18, %v1151_v48 }
 0x379   : > { %1247 = vst.msk [vmem:[%s1949_s26 + $0x58] sm:$0xff] %vm376_vm1, %v1215_v5 }
 0x37d   : > { %v880_v12 = vpop.xlane.xlu2 %879 }
 0x37e   : > { %1599 = vrcp.f32 %v880_v12  ;;  %v2094_v25 = vpop.f32.mrf.mxu3 }
 0x37f   : > { %1601 = vrcp.f32 %v895_v14 }
 0x384   : > { %v1600_v63 = vpop.eup %1599 }
 0x385   : > { %v1157_v21 = vmul.f32 %v1600_v63, %v1070_v34  ;;  %v889_v56 = vpop.xlane.xlu2 %888  ;;  %v1602_v2 = vpop.eup %1601  ;;  %v1203_v63 = vld [vmem:[%s1936_s20 + $0xf8] sm:$0xff] }
 0x386   : > { %1603 = vrcp.f32 %v889_v56  ;;  %v1083_v15 = vpop.f32.mrf.mxu3  ;;  %v904_v38 = vpop.xlane.xlu1 %903 }
 0x387   : > { %v1221_v35 = vadd.f32 %v1189_v0, %v1157_v21  ;;  %v1162_v46 = vmul.f32 %v1602_v2, %v1083_v15  ;;  %v1187_v2 = vld [vmem:[%s1936_s20 + $0x78] sm:$0xff] }
 0x389   : > { %1253 = vst.msk [vmem:[%s1949_s26 + $0x88] sm:$0xff] %vm376_vm1, %v1221_v35  ;;  %v1226_v26 = vadd.f32 %v1194_v31, %v1162_v46  ;;  %v1193_v46 = vld [vmem:[%s1936_s20 + $0xa8] sm:$0xff] }
 0x38b   : > { %1258 = vst.msk [vmem:[%s1949_s26 + $0xb0] sm:$0xff] %vm376_vm1, %v1226_v26 }
 0x38c   : > { %v1604_v40 = vpop.eup %1603 }
 0x38d   : > { %v898_v28 = vpop.xlane.xlu2 %897  ;;  %v1160_v1 = vmul.f32 %v1604_v40, %v1078_v11 }
 0x38e   : > { %1605 = vrcp.f32 %v898_v28  ;;  %v1085_v29 = vpop.f32.mrf.mxu3 }
 0x38f   : > { %v1224_v6 = vadd.f32 %v1192_v27, %v1160_v1  ;;  %1607 = vrcp.f32 %v904_v38  ;;  %v1196_v1 = vld [vmem:[%s1936_s20 + $0xc0] sm:$0xff] }
 0x391   : > { %1256 = vst.msk [vmem:[%s1949_s26 + $0xa0] sm:$0xff] %vm376_vm1, %v1224_v6 }
 0x394   : > { %v1606_v36 = vpop.eup %1605 }
 0x395   : > { %v1163_v47 = vmul.f32 %v1606_v36, %v1085_v29  ;;  %v907_v23 = vpop.xlane.xlu2 %906  ;;  %v1608_v43 = vpop.eup %1607 }
 0x396   : > { %v2106_v50 = vpop.f32.mrf.mxu3  ;;  %1609 = vrcp.f32 %v907_v23 }
 0x397   : > { %v1227_v9 = vadd.f32 %v1195_v37, %v1163_v47  ;;  %v1199_v37 = vld [vmem:[%s1936_s20 + $0xd8] sm:$0xff] }
 0x399   : > { %1259 = vst.msk [vmem:[%s1949_s26 + $0xb8] sm:$0xff] %vm376_vm1, %v1227_v9 }
 0x39c   : > { %v1610_v32 = vpop.eup %1609 }
 0x39d   : > { %v913_v34 = vpop.xlane.xlu1 %912 }
 0x39e   : > { %v1090_v33 = vpop.f32.mrf.mxu3  ;;  %1611 = vrcp.f32 %v913_v34 }
 0x39f   : > { %v1165_v10 = vmul.f32 %v1608_v43, %v1090_v33  ;;  %v1202_v43 = vld [vmem:[%s1936_s20 + $0xf0] sm:$0xff] }
 0x3a1   : > { %v1229_v24 = vadd.f32 %v1197_v42, %v1165_v10 }
 0x3a3   : > { %1261 = vst.msk [vmem:[%s1949_s26 + $0xc8] sm:$0xff] %vm376_vm1, %v1229_v24 }
 0x3a4   : > { %v1612_v41 = vpop.eup %1611 }
 0x3a5   : > { %v916_v51 = vpop.xlane.xlu2 %915 }
 0x3a6   : > { %v1093_v52 = vpop.f32.mrf.mxu3  ;;  %1613 = vrcp.f32 %v916_v51 }
 0x3a7   : > { %v1166_v13 = vmul.f32 %v1610_v32, %v1093_v52  ;;  %1615 = vrcp.f32 %v2089_v8  ;;  %v1190_v8 = vld [vmem:[%s1936_s20 + $0x90] sm:$0xff] }
 0x3a9   : > { %v1230_v17 = vadd.f32 %v1198_v30, %v1166_v13 }
 0x3ab   : > { %1262 = vst.msk [vmem:[%s1949_s26 + $0xd0] sm:$0xff] %vm376_vm1, %v1230_v17 }
 0x3ac   : > { %v1614_v20 = vpop.eup %1613 }
 0x3ad   : > { %v1616_v62 = vpop.eup %1615 }
 0x3ae   : > { %v2116_v49 = vpop.f32.mrf.mxu3 }
 0x3b5   : > { %v922_v22 = vpop.xlane.xlu1 %921 }
 0x3b6   : > { %v1098_v54 = vpop.f32.mrf.mxu3 }
 0x3b7   : > { %v1168_v16 = vmul.f32 %v1612_v41, %v1098_v54 }
 0x3b9   : > { %v1232_v53 = vadd.f32 %v1200_v55, %v1168_v16 }
 0x3bb   : > { %1264 = vst.msk [vmem:[%s1949_s26 + $0xe0] sm:$0xff] %vm376_vm1, %v1232_v53 }
 0x3bd   : > { %v874_v45 = vpop.xlane.xlu0 %873 }
 0x3be   : > { %v1100_v61 = vpop.f32.mrf.mxu3 }
 0x3bf   : > { %v1169_v19 = vmul.f32 %v1614_v20, %v1100_v61 }
 0x3c1   : > { %v1233_v59 = vadd.f32 %v1201_v39, %v1169_v19 }
 0x3c3   : > { %1265 = vst.msk [vmem:[%s1949_s26 + $0xe8] sm:$0xff] %vm376_vm1, %v1233_v59 }
 0x3c5   : > { %v883_v57 = vpop.xlane.xlu0 %882 }
 0x3c6   : > { %1617 = vrcp.f32 %v883_v57  ;;  %v1103_v3 = vpop.f32.mrf.mxu3 }
 0x3c7   : > { %1619 = vrcp.f32 %v922_v22 }
 0x3c8   : > { %v1063_v4 = vpop.f32.mrf.mxu0  ;;  %1621 = vrcp.f32 %v874_v45 }
 0x3c9   : > { %v1154_v60 = vmul.f32 %v1616_v62, %v1063_v4 }
 0x3cb   : > { %v1218_v7 = vadd.f32 %v1186_v44, %v1154_v60 }
 0x3cc   : > { %v1618_v18 = vpop.eup %1617 }
 0x3cd   : > { %v1158_v48 = vmul.f32 %v1618_v18, %v2073_v58  ;;  %1250 = vst.msk [vmem:[%s1949_s26 + $0x70] sm:$0xff] %vm376_vm1, %v1218_v7  ;;  %v892_v11 = vpop.xlane.xlu0 %891  ;;  %v1620_v5 = vpop.eup %1619 }
 0x3ce   : > { %1623 = vrcp.f32 %v892_v11  ;;  %v1105_v14 = vpop.f32.mrf.mxu3  ;;  %v1622_v0 = vpop.eup %1621 }
 0x3cf   : > { %v1222_v12 = vadd.f32 %v1190_v8, %v1158_v48  ;;  %v1171_v21 = vmul.f32 %v1620_v5, %v1105_v14 }
 0x3d0   : > { %v1065_v56 = vpop.f32.mrf.mxu0 }
 0x3d1   : > { %1254 = vst.msk [vmem:[%s1949_s26 + $0x90] sm:$0xff] %vm376_vm1, %v1222_v12  ;;  %v1155_v58 = vmul.f32 %v1622_v0, %v1065_v56  ;;  %v1235_v35 = vadd.f32 %v1203_v63, %v1171_v21 }
 0x3d3   : > { %v1219_v15 = vadd.f32 %v1187_v2, %v1155_v58  ;;  %1267 = vst.msk [vmem:[%s1949_s26 + $0xf8] sm:$0xff] %vm376_vm1, %v1235_v35 }
 0x3d4   : > { %v1624_v31 = vpop.eup %1623 }
 0x3d5   : > { %v1161_v26 = vmul.f32 %v1624_v31, %v2094_v25  ;;  %1251 = vst.msk [vmem:[%s1949_s26 + $0x78] sm:$0xff] %vm376_vm1, %v1219_v15  ;;  %v901_v40 = vpop.xlane.xlu0 %900 }
 0x3d6   : > { %1625 = vrcp.f32 %v901_v40 }
 0x3d7   : > { %v1225_v27 = vadd.f32 %v1193_v46, %v1161_v26 }
 0x3d9   : > { %1257 = vst.msk [vmem:[%s1949_s26 + $0xa8] sm:$0xff] %vm376_vm1, %v1225_v27 }
 0x3dc   : > { %v1626_v28 = vpop.eup %1625 }
 0x3dd   : > { %v1164_v29 = vmul.f32 %v1626_v28, %v2106_v50  ;;  %v910_v6 = vpop.xlane.xlu0 %909 }
 0x3de   : > { %1627 = vrcp.f32 %v910_v6 }
 0x3df   : > { %v1228_v36 = vadd.f32 %v1196_v1, %v1164_v29 }
 0x3e1   : > { %1260 = vst.msk [vmem:[%s1949_s26 + $0xc0] sm:$0xff] %vm376_vm1, %v1228_v36 }
 0x3e4   : > { %v1628_v25 = vpop.eup %1627 }
 0x3e5   : > { %v1167_v47 = vmul.f32 %v1628_v25, %v2116_v49  ;;  %v919_v38 = vpop.xlane.xlu0 %918 }
 0x3e6   : > { %1629 = vrcp.f32 %v919_v38 }
 0x3e7   : > { %v1231_v9 = vadd.f32 %v1199_v37, %v1167_v47 }
 0x3e9   : > { %1263 = vst.msk [vmem:[%s1949_s26 + $0xd8] sm:$0xff] %vm376_vm1, %v1231_v9 }
 0x3ec   : > { %v1630_v23 = vpop.eup %1629 }
 0x3ed   : > { %v1170_v33 = vmul.f32 %v1630_v23, %v1103_v3 }
 0x3ef   : > { %v1234_v42 = vadd.f32 %v1202_v43, %v1170_v33 }
 0x3f1   : > { %1266 = vst.msk [vmem:[%s1949_s26 + $0xf0] sm:$0xff] %vm376_vm1, %v1234_v42 }
 0x3f2 PF: > { %s16_s23 = sadd.s32 1, %s1653_s23   ;;  %s2169_s21 = smov %s1649_s22 }
 0x3f3   : > { %p13_p5 = scmp.ge.s32.totalorder %s16_s23, 4   ;;  %s2170_s22 = smov %s2172_s24 }
 0x3f5   :  { %15 = sbr.rel (!%p13_p5) target bundleno = 2 (0x2), region = 83 }

</bundles_post_ra>
